<compile_context>
chip_gen: v7x
topology: tpu7x:2x2x1
jax: 0.10.0
libtpu: 0.0.40
codegen_flags: <defaults>
</compile_context>

<pallas_src>
import jax
import jax.numpy as jnp
from jax.experimental import pallas as pl
from jax.experimental.pallas import tpu as pltpu


def _round_up(x, m):
    return ((x + m - 1) // m) * m


def _build_banded_weight(w_hwio, w_in, w_out, pw, out_scale):
    """HWIO conv weight -> per-row banded matmul weights (BN scale folded in).

    Returns B of shape (kh, w_in*ci, w_out*co), bfloat16, with
        B[dy, s*ci + c, j*co + o] = w[dy, s - j + pw, c, o] * out_scale[o]
                                    if 0 <= s-j+pw < kw else 0
    so a stride-1 'same' conv (horizontal zero padding pw) becomes
        out[i, j*co + o] = sum_dy (x2d[i + dy, :] @ B[dy])[j*co + o]
    where x2d[r, s*ci + c] is the vertically padded image in (rows, W*Cin) form.
    """
    kh, kw, ci, co = w_hwio.shape
    s_idx = jnp.arange(w_in)[:, None]                  # (w_in, 1)
    j_idx = jnp.arange(w_out)[None, :]                 # (1, w_out)
    dx = s_idx - j_idx + pw                            # (w_in, w_out)
    valid = (dx >= 0) & (dx < kw)
    dx_c = jnp.clip(dx, 0, kw - 1)
    g = w_hwio[:, dx_c]                                # (kh, w_in, w_out, ci, co)
    g = jnp.where(valid[None, :, :, None, None], g, 0.0)
    g = g * out_scale[None, None, None, None, :]       # fold BN scale (per out-chan)
    g = jnp.transpose(g, (0, 1, 3, 2, 4))              # (kh, w_in, ci, w_out, co)
    return g.reshape(kh, w_in * ci, w_out * co).astype(jnp.bfloat16)


def _make_fused_kernel(*, batch, h, h1, h2, ph1, ph2, kh1, kh2,
                       pitch, guard, relu):
    """Fused conv1 -> shift -> conv2 -> shift -> [relu] over `batch` images."""
    m1 = (batch - 1) * pitch + h1          # rows of acc1 actually needed
    m2 = (batch - 1) * pitch + h2          # rows of acc2 actually needed
    s1 = guard - ph1                        # conv1 read-slice offset
    s2 = guard - ph2                        # conv2 read-slice offset

    def kernel(x_ref, b1_ref, t1_ref, b2_ref, t2_ref, o_ref,
               pad1_ref, pad2_ref):
        wcin = pad1_ref.shape[1]
        wc1 = pad2_ref.shape[1]
        wc2 = o_ref.shape[2]
        cdt = pad1_ref.dtype                # bfloat16 compute dtype

        # ---- stage 1: scatter the image batch into the padded slab --------
        # Only guard + inter-image gap rows are zeroed (aligned, few rows);
        # data rows are plain overwrites.  Done every step (core-safe).
        if guard > 0:
            pad1_ref[0:guard, :] = jnp.zeros((guard, wcin), cdt)
        for b in range(batch):
            base = guard + b * pitch
            pad1_ref[base:base + h, :] = x_ref[b]
            if pitch > h:
                pad1_ref[base + h:base + pitch, :] = jnp.zeros(
                    (pitch - h, wcin), cdt)

        # conv1 as kh1 row-shifted MXU matmuls (bf16 x bf16 -> f32 acc).
        acc1 = jnp.dot(pad1_ref[s1:s1 + m1, :], b1_ref[0],
                       preferred_element_type=jnp.float32)
        for dy in range(1, kh1):
            acc1 = acc1 + jnp.dot(pad1_ref[s1 + dy:s1 + dy + m1, :], b1_ref[dy],
                                  preferred_element_type=jnp.float32)
        # BN scale already folded into b1; conv bias folded into the shift.
        y1 = (acc1 + t1_ref[...]).astype(cdt)

        # ---- stage 2: same trick on the intermediate activation -----------
        # One aligned lane-dense dump, then re-zero guard and gap rows (the
        # dump writes never-used garbage rows into the gaps).
        pad2_ref[guard:guard + m1, :] = y1
        if guard > 0:
            pad2_ref[0:guard, :] = jnp.zeros((guard, wc1), cdt)
        for b in range(batch):
            gs = guard + b * pitch + h1
            ge = guard + (b + 1) * pitch
            if ge > gs:
                pad2_ref[gs:ge, :] = jnp.zeros((ge - gs, wc1), cdt)

        acc2 = jnp.dot(pad2_ref[s2:s2 + m2, :], b2_ref[0],
                       preferred_element_type=jnp.float32)
        for dy in range(1, kh2):
            acc2 = acc2 + jnp.dot(pad2_ref[s2 + dy:s2 + dy + m2, :], b2_ref[dy],
                                  preferred_element_type=jnp.float32)
        y2 = acc2 + t2_ref[...]
        if relu:
            y2 = jnp.maximum(y2, 0.0)
        y2 = y2.astype(o_ref.dtype)

        # Lane-dense (last dim = W*Cout = 128) aligned per-image stores.
        for b in range(batch):
            o_ref[b] = y2[b * pitch:b * pitch + h2, :]

    return kernel


def twoconv_forward(x_nchw, params, *, stride=1, with_relu=False,
                    max_images_per_step=8):
    """TwoConv.forward.  Input/output are NCHW to match PyTorch."""
    assert stride == 1, "TODO(synk): stride > 1 not implemented in the kernel"
    n, cin, h, w = x_nchw.shape
    w1_hwio, w2_hwio = params["w1"], params["w2"]
    kh1, kw1, _, cout = w1_hwio.shape
    kh2, kw2, _, _ = w2_hwio.shape
    ph1, pw1 = kh1 // 2, kw1 // 2           # PyTorch padding = int(k / 2)
    ph2, pw2 = kh2 // 2, kw2 // 2
    h1 = h + 2 * ph1 - kh1 + 1
    w1o = w + 2 * pw1 - kw1 + 1
    h2 = h1 + 2 * ph2 - kh2 + 1
    w2o = w1o + 2 * pw2 - kw2 + 1
    wcin, wc1, wc2 = w * cin, w1o * cout, w2o * cout

    # Images per grid step: grow the MXU M-dim, but keep >= 2 grid steps
    # whenever possible so both v7x TensorCores get work.
    b_img = max(1, min(max_images_per_step, pl.cdiv(n, 2)))
    n_pad = pl.cdiv(n, b_img) * b_img
    grid = n_pad // b_img

    # Per-image row pitch (multiple of 8 -> aligned data stores / slices) and
    # top guard rows; the slab row count covers every shifted read.
    pitch = _round_up(max(h + 2 * ph1, h1 + 2 * ph2), 8)
    guard = _round_up(max(ph1, ph2), 8)
    nrows = guard + b_img * pitch
    m1 = (b_img - 1) * pitch + h1
    m2 = (b_img - 1) * pitch + h2

    # NCHW -> (N, H, W*Cin) channels-last slab in bf16 (halves input DMA).
    x = jnp.transpose(x_nchw, (0, 2, 3, 1)).reshape(n, h, wcin)
    x = x.astype(jnp.bfloat16)
    if n_pad != n:
        x = jnp.concatenate(
            [x, jnp.zeros((n_pad - n, h, wcin), x.dtype)], axis=0)

    # Banded matmul weights with eval-mode BN scale folded into the output
    # columns; conv bias folded into the additive shift.
    s1, sh1 = params["bn1_scale"], params["bn1_shift"]
    s2, sh2 = params["bn2_scale"], params["bn2_shift"]
    b1 = _build_banded_weight(w1_hwio, w, w1o, pw1, s1)      # (kh1, W*Cin,  W1*Co)
    b2 = _build_banded_weight(w2_hwio, w1o, w2o, pw2, s2)    # (kh2, W1*Co, W2*Co)
    t1t = jnp.tile(params["b1"] * s1 + sh1, w1o).reshape(1, wc1).astype(jnp.float32)
    t2t = jnp.tile(params["b2"] * s2 + sh2, w2o).reshape(1, wc2).astype(jnp.float32)

    kernel = _make_fused_kernel(batch=b_img, h=h, h1=h1, h2=h2,
                                ph1=ph1, ph2=ph2, kh1=kh1, kh2=kh2,
                                pitch=pitch, guard=guard, relu=with_relu)

    out_dtype = x_nchw.dtype
    flops = 2 * grid * (kh1 * m1 * wcin * wc1 + kh2 * m2 * wc1 * wc2)
    bytes_accessed = (n_pad * h * wcin * 2          # bf16 input
                      + b1.size * 2 + b2.size * 2   # bf16 banded weights
                      + t1t.size * 4 + t2t.size * 4
                      + n_pad * h2 * wc2 * jnp.dtype(out_dtype).itemsize)
    cost = pl.CostEstimate(flops=int(flops), transcendentals=0,
                           bytes_accessed=int(bytes_accessed))

    out = pl.pallas_call(
        kernel,
        out_shape=jax.ShapeDtypeStruct((n_pad, h2, wc2), out_dtype),
        grid_spec=pltpu.PrefetchScalarGridSpec(
            num_scalar_prefetch=0,
            grid=(grid,),
            in_specs=[
                pl.BlockSpec((b_img, h, wcin), lambda i: (i, 0, 0)),
                pl.BlockSpec((kh1, wcin, wc1), lambda i: (0, 0, 0)),
                pl.BlockSpec((1, wc1), lambda i: (0, 0)),
                pl.BlockSpec((kh2, wc1, wc2), lambda i: (0, 0, 0)),
                pl.BlockSpec((1, wc2), lambda i: (0, 0)),
            ],
            out_specs=pl.BlockSpec((b_img, h2, wc2), lambda i: (i, 0, 0)),
            scratch_shapes=[
                pltpu.VMEM((nrows, wcin), jnp.bfloat16),   # padded input slab
                pltpu.VMEM((nrows, wc1), jnp.bfloat16),    # padded mid slab
            ],
        ),
        compiler_params=pltpu.CompilerParams(
            dimension_semantics=("parallel",)),
        cost_estimate=cost,
    )(x, b1, t1t, b2, t2t)

    out = out[:n].reshape(n, h2, w2o, cout)
    return jnp.transpose(out, (0, 3, 1, 2))                 # NHWC -> NCHW


def init_twoconv_params(key, in_channels, out_channels, kx1, ky1, kx2, ky2,
                        with_bn=False):
    """Deterministic synthetic parameters (shapes match the nn.Module)."""
    k1, k2, k3, k4 = jax.random.split(key, 4)
    params = {
        # HWIO layout (PyTorch stores OIHW; same tensor, different layout).
        "w1": jax.random.normal(k1, (kx1, ky1, in_channels, out_channels),
                                jnp.float32) * 0.1,
        "b1": jax.random.normal(k2, (out_channels,), jnp.float32) * 0.05,
        "w2": jax.random.normal(k3, (kx2, ky2, out_channels, out_channels),
                                jnp.float32) * 0.1,
        "b2": jax.random.normal(k4, (out_channels,), jnp.float32) * 0.05,
    }
    if with_bn:
        # Eval-mode BN parameters folded to per-channel scale/shift.
        eps = 1e-5
        gamma = jnp.linspace(0.8, 1.2, out_channels, dtype=jnp.float32)
        beta = jnp.linspace(-0.1, 0.1, out_channels, dtype=jnp.float32)
        mean = jnp.linspace(-0.05, 0.05, out_channels, dtype=jnp.float32)
        var = jnp.linspace(0.9, 1.1, out_channels, dtype=jnp.float32)
        scale = gamma / jnp.sqrt(var + eps)
        for i in (1, 2):
            params[f"bn{i}_scale"] = scale
            params[f"bn{i}_shift"] = beta - mean * scale
    else:
        ones = jnp.ones((out_channels,), jnp.float32)
        zeros = jnp.zeros((out_channels,), jnp.float32)
        for i in (1, 2):
            params[f"bn{i}_scale"] = ones
            params[f"bn{i}_shift"] = zeros
    return params


def _reference_forward(x_nchw, params, *, with_relu=False):
    """Pure-JAX (XLA conv, f32) reference for correctness checking."""
    def conv(x, wgt, b, scale, shift):
        kh, kw = wgt.shape[0], wgt.shape[1]
        y = jax.lax.conv_general_dilated(
            x, wgt, window_strides=(1, 1),
            padding=[(kh // 2, kh // 2), (kw // 2, kw // 2)],
            dimension_numbers=("NHWC", "HWIO", "NHWC"))
        return (y + b) * scale + shift

    x = jnp.transpose(x_nchw, (0, 2, 3, 1))
    x = conv(x, params["w1"], params["b1"],
             params["bn1_scale"], params["bn1_shift"])
    x = conv(x, params["w2"], params["b2"],
             params["bn2_scale"], params["bn2_shift"])
    if with_relu:
        x = jnp.maximum(x, 0.0)
    return jnp.transpose(x, (0, 3, 1, 2))


if __name__ == "__main__":
    # Module config: TwoConv(in=4, out=8, kx1=ky1=3, kx2=ky2=3, stride=1,
    #                        bias=True, with_bn=False, with_relu=False)
    IN_C, OUT_C = 4, 8
    KX1, KY1, KX2, KY2 = 3, 3, 3, 3
    WITH_BN = False
    WITH_RELU = False

    key = jax.random.PRNGKey(0)
    kx, kp = jax.random.split(key)
    # 16 images so the kernel runs 2 grid steps of 8 batched images each.
    x = jax.random.normal(kx, (16, IN_C, 16, 16), jnp.float32)   # NCHW
    params = init_twoconv_params(kp, IN_C, OUT_C, KX1, KY1, KX2, KY2,
                                 with_bn=WITH_BN)

    out = jax.block_until_ready(
        twoconv_forward(x, params, stride=1, with_relu=WITH_RELU))

    ref = jax.block_until_ready(
        _reference_forward(x, params, with_relu=WITH_RELU))
    assert out.shape == (16, OUT_C, 16, 16), out.shape
    # bf16 matmul inputs (f32 accumulation) -> loosened tolerance vs f32 ref.
    assert jnp.allclose(out, ref, atol=5e-2, rtol=5e-2), \
        float(jnp.max(jnp.abs(out - ref)))

    print("KERNEL_OK")
</pallas_src>

<mosaic_0001>
module attributes {stable_mosaic.version = 11 : i64} {
  func.func @kernel(%arg0: i32, %arg1: memref<8x16x64xbf16, #tpu.memory_space<vmem>>, %arg2: memref<3x64x128xbf16, #tpu.memory_space<vmem>>, %arg3: memref<1x128xf32, #tpu.memory_space<vmem>>, %arg4: memref<3x128x128xbf16, #tpu.memory_space<vmem>>, %arg5: memref<1x128xf32, #tpu.memory_space<vmem>>, %arg6: memref<8x16x128xf32, #tpu.memory_space<vmem>>, %arg7: memref<200x64xbf16, #tpu.memory_space<vmem>>, %arg8: memref<200x128xbf16, #tpu.memory_space<vmem>>) attributes {dimension_semantics = [#tpu.dimension_semantics<parallel>], iteration_bounds = array<i64: 2>, scalar_prefetch = 0 : i64, scratch_operands = 2 : i64, tpu.core_type = #tpu.core_type<tc>, window_params = [{transform_indices = @transform_0, window_bounds = array<i64: 8, 16, 64>}, {pipeline_mode = #tpu.pipeline_mode<synchronous>, transform_indices = @transform_1, window_bounds = array<i64: 3, 64, 128>}, {pipeline_mode = #tpu.pipeline_mode<synchronous>, transform_indices = @transform_2, window_bounds = array<i64: 1, 128>}, {pipeline_mode = #tpu.pipeline_mode<synchronous>, transform_indices = @transform_3, window_bounds = array<i64: 3, 128, 128>}, {pipeline_mode = #tpu.pipeline_mode<synchronous>, transform_indices = @transform_4, window_bounds = array<i64: 1, 128>}, {transform_indices = @transform_5, window_bounds = array<i64: 8, 16, 128>}]} {
    %cst = arith.constant 0.000000e+00 : bf16
    %0 = vector.broadcast %cst : bf16 to vector<8x64xbf16>
    %c0 = arith.constant 0 : index
    %c0_0 = arith.constant 0 : index
    %1 = vector.load %arg7[%c0, %c0_0] : memref<200x64xbf16, #tpu.memory_space<vmem>>, vector<8x64xbf16>
    tpu.vector_store %arg7[%c0, %c0_0], %0 {strides = array<i32>} : memref<200x64xbf16, #tpu.memory_space<vmem>>, vector<8x64xbf16>,
    %c0_1 = arith.constant 0 : index
    %c0_2 = arith.constant 0 : index
    %c0_3 = arith.constant 0 : index
    %2 = vector.load %arg1[%c0_1, %c0_2, %c0_3] : memref<8x16x64xbf16, #tpu.memory_space<vmem>>, vector<1x16x64xbf16>
    %3 = vector.shape_cast %2 : vector<1x16x64xbf16> to vector<16x64xbf16>
    %c8 = arith.constant 8 : index
    %c0_4 = arith.constant 0 : index
    %4 = vector.load %arg7[%c8, %c0_4] : memref<200x64xbf16, #tpu.memory_space<vmem>>, vector<16x64xbf16>
    tpu.vector_store %arg7[%c8, %c0_4], %3 {strides = array<i32>} : memref<200x64xbf16, #tpu.memory_space<vmem>>, vector<16x64xbf16>,
    %cst_5 = arith.constant 0.000000e+00 : bf16
    %5 = vector.broadcast %cst_5 : bf16 to vector<8x64xbf16>
    %c24 = arith.constant 24 : index
    %c0_6 = arith.constant 0 : index
    %6 = vector.load %arg7[%c24, %c0_6] : memref<200x64xbf16, #tpu.memory_space<vmem>>, vector<8x64xbf16>
    tpu.vector_store %arg7[%c24, %c0_6], %5 {strides = array<i32>} : memref<200x64xbf16, #tpu.memory_space<vmem>>, vector<8x64xbf16>,
    %c1 = arith.constant 1 : index
    %c0_7 = arith.constant 0 : index
    %c0_8 = arith.constant 0 : index
    %7 = vector.load %arg1[%c1, %c0_7, %c0_8] : memref<8x16x64xbf16, #tpu.memory_space<vmem>>, vector<1x16x64xbf16>
    %8 = vector.shape_cast %7 : vector<1x16x64xbf16> to vector<16x64xbf16>
    %c32 = arith.constant 32 : index
    %c0_9 = arith.constant 0 : index
    %9 = vector.load %arg7[%c32, %c0_9] : memref<200x64xbf16, #tpu.memory_space<vmem>>, vector<16x64xbf16>
    tpu.vector_store %arg7[%c32, %c0_9], %8 {strides = array<i32>} : memref<200x64xbf16, #tpu.memory_space<vmem>>, vector<16x64xbf16>,
    %cst_10 = arith.constant 0.000000e+00 : bf16
    %10 = vector.broadcast %cst_10 : bf16 to vector<8x64xbf16>
    %c48 = arith.constant 48 : index
    %c0_11 = arith.constant 0 : index
    %11 = vector.load %arg7[%c48, %c0_11] : memref<200x64xbf16, #tpu.memory_space<vmem>>, vector<8x64xbf16>
    tpu.vector_store %arg7[%c48, %c0_11], %10 {strides = array<i32>} : memref<200x64xbf16, #tpu.memory_space<vmem>>, vector<8x64xbf16>,
    %c2 = arith.constant 2 : index
    %c0_12 = arith.constant 0 : index
    %c0_13 = arith.constant 0 : index
    %12 = vector.load %arg1[%c2, %c0_12, %c0_13] : memref<8x16x64xbf16, #tpu.memory_space<vmem>>, vector<1x16x64xbf16>
    %13 = vector.shape_cast %12 : vector<1x16x64xbf16> to vector<16x64xbf16>
    %c56 = arith.constant 56 : index
    %c0_14 = arith.constant 0 : index
    %14 = vector.load %arg7[%c56, %c0_14] : memref<200x64xbf16, #tpu.memory_space<vmem>>, vector<16x64xbf16>
    tpu.vector_store %arg7[%c56, %c0_14], %13 {strides = array<i32>} : memref<200x64xbf16, #tpu.memory_space<vmem>>, vector<16x64xbf16>,
    %cst_15 = arith.constant 0.000000e+00 : bf16
    %15 = vector.broadcast %cst_15 : bf16 to vector<8x64xbf16>
    %c72 = arith.constant 72 : index
    %c0_16 = arith.constant 0 : index
    %16 = vector.load %arg7[%c72, %c0_16] : memref<200x64xbf16, #tpu.memory_space<vmem>>, vector<8x64xbf16>
    tpu.vector_store %arg7[%c72, %c0_16], %15 {strides = array<i32>} : memref<200x64xbf16, #tpu.memory_space<vmem>>, vector<8x64xbf16>,
    %c3 = arith.constant 3 : index
    %c0_17 = arith.constant 0 : index
    %c0_18 = arith.constant 0 : index
    %17 = vector.load %arg1[%c3, %c0_17, %c0_18] : memref<8x16x64xbf16, #tpu.memory_space<vmem>>, vector<1x16x64xbf16>
    %18 = vector.shape_cast %17 : vector<1x16x64xbf16> to vector<16x64xbf16>
    %c80 = arith.constant 80 : index
    %c0_19 = arith.constant 0 : index
    %19 = vector.load %arg7[%c80, %c0_19] : memref<200x64xbf16, #tpu.memory_space<vmem>>, vector<16x64xbf16>
    tpu.vector_store %arg7[%c80, %c0_19], %18 {strides = array<i32>} : memref<200x64xbf16, #tpu.memory_space<vmem>>, vector<16x64xbf16>,
    %cst_20 = arith.constant 0.000000e+00 : bf16
    %20 = vector.broadcast %cst_20 : bf16 to vector<8x64xbf16>
    %c96 = arith.constant 96 : index
    %c0_21 = arith.constant 0 : index
    %21 = vector.load %arg7[%c96, %c0_21] : memref<200x64xbf16, #tpu.memory_space<vmem>>, vector<8x64xbf16>
    tpu.vector_store %arg7[%c96, %c0_21], %20 {strides = array<i32>} : memref<200x64xbf16, #tpu.memory_space<vmem>>, vector<8x64xbf16>,
    %c4 = arith.constant 4 : index
    %c0_22 = arith.constant 0 : index
    %c0_23 = arith.constant 0 : index
    %22 = vector.load %arg1[%c4, %c0_22, %c0_23] : memref<8x16x64xbf16, #tpu.memory_space<vmem>>, vector<1x16x64xbf16>
    %23 = vector.shape_cast %22 : vector<1x16x64xbf16> to vector<16x64xbf16>
    %c104 = arith.constant 104 : index
    %c0_24 = arith.constant 0 : index
    %24 = vector.load %arg7[%c104, %c0_24] : memref<200x64xbf16, #tpu.memory_space<vmem>>, vector<16x64xbf16>
    tpu.vector_store %arg7[%c104, %c0_24], %23 {strides = array<i32>} : memref<200x64xbf16, #tpu.memory_space<vmem>>, vector<16x64xbf16>,
    %cst_25 = arith.constant 0.000000e+00 : bf16
    %25 = vector.broadcast %cst_25 : bf16 to vector<8x64xbf16>
    %c120 = arith.constant 120 : index
    %c0_26 = arith.constant 0 : index
    %26 = vector.load %arg7[%c120, %c0_26] : memref<200x64xbf16, #tpu.memory_space<vmem>>, vector<8x64xbf16>
    tpu.vector_store %arg7[%c120, %c0_26], %25 {strides = array<i32>} : memref<200x64xbf16, #tpu.memory_space<vmem>>, vector<8x64xbf16>,
    %c5 = arith.constant 5 : index
    %c0_27 = arith.constant 0 : index
    %c0_28 = arith.constant 0 : index
    %27 = vector.load %arg1[%c5, %c0_27, %c0_28] : memref<8x16x64xbf16, #tpu.memory_space<vmem>>, vector<1x16x64xbf16>
    %28 = vector.shape_cast %27 : vector<1x16x64xbf16> to vector<16x64xbf16>
    %c128 = arith.constant 128 : index
    %c0_29 = arith.constant 0 : index
    %29 = vector.load %arg7[%c128, %c0_29] : memref<200x64xbf16, #tpu.memory_space<vmem>>, vector<16x64xbf16>
    tpu.vector_store %arg7[%c128, %c0_29], %28 {strides = array<i32>} : memref<200x64xbf16, #tpu.memory_space<vmem>>, vector<16x64xbf16>,
    %cst_30 = arith.constant 0.000000e+00 : bf16
    %30 = vector.broadcast %cst_30 : bf16 to vector<8x64xbf16>
    %c144 = arith.constant 144 : index
    %c0_31 = arith.constant 0 : index
    %31 = vector.load %arg7[%c144, %c0_31] : memref<200x64xbf16, #tpu.memory_space<vmem>>, vector<8x64xbf16>
    tpu.vector_store %arg7[%c144, %c0_31], %30 {strides = array<i32>} : memref<200x64xbf16, #tpu.memory_space<vmem>>, vector<8x64xbf16>,
    %c6 = arith.constant 6 : index
    %c0_32 = arith.constant 0 : index
    %c0_33 = arith.constant 0 : index
    %32 = vector.load %arg1[%c6, %c0_32, %c0_33] : memref<8x16x64xbf16, #tpu.memory_space<vmem>>, vector<1x16x64xbf16>
    %33 = vector.shape_cast %32 : vector<1x16x64xbf16> to vector<16x64xbf16>
    %c152 = arith.constant 152 : index
    %c0_34 = arith.constant 0 : index
    %34 = vector.load %arg7[%c152, %c0_34] : memref<200x64xbf16, #tpu.memory_space<vmem>>, vector<16x64xbf16>
    tpu.vector_store %arg7[%c152, %c0_34], %33 {strides = array<i32>} : memref<200x64xbf16, #tpu.memory_space<vmem>>, vector<16x64xbf16>,
    %cst_35 = arith.constant 0.000000e+00 : bf16
    %35 = vector.broadcast %cst_35 : bf16 to vector<8x64xbf16>
    %c168 = arith.constant 168 : index
    %c0_36 = arith.constant 0 : index
    %36 = vector.load %arg7[%c168, %c0_36] : memref<200x64xbf16, #tpu.memory_space<vmem>>, vector<8x64xbf16>
    tpu.vector_store %arg7[%c168, %c0_36], %35 {strides = array<i32>} : memref<200x64xbf16, #tpu.memory_space<vmem>>, vector<8x64xbf16>,
    %c7 = arith.constant 7 : index
    %c0_37 = arith.constant 0 : index
    %c0_38 = arith.constant 0 : index
    %37 = vector.load %arg1[%c7, %c0_37, %c0_38] : memref<8x16x64xbf16, #tpu.memory_space<vmem>>, vector<1x16x64xbf16>
    %38 = vector.shape_cast %37 : vector<1x16x64xbf16> to vector<16x64xbf16>
    %c176 = arith.constant 176 : index
    %c0_39 = arith.constant 0 : index
    %39 = vector.load %arg7[%c176, %c0_39] : memref<200x64xbf16, #tpu.memory_space<vmem>>, vector<16x64xbf16>
    tpu.vector_store %arg7[%c176, %c0_39], %38 {strides = array<i32>} : memref<200x64xbf16, #tpu.memory_space<vmem>>, vector<16x64xbf16>,
    %cst_40 = arith.constant 0.000000e+00 : bf16
    %40 = vector.broadcast %cst_40 : bf16 to vector<8x64xbf16>
    %c192 = arith.constant 192 : index
    %c0_41 = arith.constant 0 : index
    %41 = vector.load %arg7[%c192, %c0_41] : memref<200x64xbf16, #tpu.memory_space<vmem>>, vector<8x64xbf16>
    tpu.vector_store %arg7[%c192, %c0_41], %40 {strides = array<i32>} : memref<200x64xbf16, #tpu.memory_space<vmem>>, vector<8x64xbf16>,
    %c7_42 = arith.constant 7 : index
    %c0_43 = arith.constant 0 : index
    %42 = vector.load %arg7[%c7_42, %c0_43] : memref<200x64xbf16, #tpu.memory_space<vmem>>, vector<184x64xbf16>
    %c0_44 = arith.constant 0 : index
    %c0_45 = arith.constant 0 : index
    %c0_46 = arith.constant 0 : index
    %43 = vector.load %arg2[%c0_44, %c0_45, %c0_46] : memref<3x64x128xbf16, #tpu.memory_space<vmem>>, vector<1x64x128xbf16>
    %44 = vector.shape_cast %43 : vector<1x64x128xbf16> to vector<64x128xbf16>
    %cst_47 = arith.constant dense<0.000000e+00> : vector<184x128xf32>
    %45 = tpu.matmul %42, %44, %cst_47 {dimension_numbers = #tpu.dot_dimension_numbers<[1], [0], [0], [1], [0, 0, 1, 1], [], []>} : vector<184x64xbf16>, vector<64x128xbf16>, vector<184x128xf32> -> vector<184x128xf32>
    %c8_48 = arith.constant 8 : index
    %c0_49 = arith.constant 0 : index
    %46 = vector.load %arg7[%c8_48, %c0_49] : memref<200x64xbf16, #tpu.memory_space<vmem>>, vector<184x64xbf16>
    %c1_50 = arith.constant 1 : index
    %c0_51 = arith.constant 0 : index
    %c0_52 = arith.constant 0 : index
    %47 = vector.load %arg2[%c1_50, %c0_51, %c0_52] : memref<3x64x128xbf16, #tpu.memory_space<vmem>>, vector<1x64x128xbf16>
    %48 = vector.shape_cast %47 : vector<1x64x128xbf16> to vector<64x128xbf16>
    %cst_53 = arith.constant dense<0.000000e+00> : vector<184x128xf32>
    %49 = tpu.matmul %46, %48, %cst_53 {dimension_numbers = #tpu.dot_dimension_numbers<[1], [0], [0], [1], [0, 0, 1, 1], [], []>} : vector<184x64xbf16>, vector<64x128xbf16>, vector<184x128xf32> -> vector<184x128xf32>
    %50 = arith.addf %45, %49 : vector<184x128xf32>
    %c9 = arith.constant 9 : index
    %c0_54 = arith.constant 0 : index
    %51 = vector.load %arg7[%c9, %c0_54] : memref<200x64xbf16, #tpu.memory_space<vmem>>, vector<184x64xbf16>
    %c2_55 = arith.constant 2 : index
    %c0_56 = arith.constant 0 : index
    %c0_57 = arith.constant 0 : index
    %52 = vector.load %arg2[%c2_55, %c0_56, %c0_57] : memref<3x64x128xbf16, #tpu.memory_space<vmem>>, vector<1x64x128xbf16>
    %53 = vector.shape_cast %52 : vector<1x64x128xbf16> to vector<64x128xbf16>
    %cst_58 = arith.constant dense<0.000000e+00> : vector<184x128xf32>
    %54 = tpu.matmul %51, %53, %cst_58 {dimension_numbers = #tpu.dot_dimension_numbers<[1], [0], [0], [1], [0, 0, 1, 1], [], []>} : vector<184x64xbf16>, vector<64x128xbf16>, vector<184x128xf32> -> vector<184x128xf32>
    %55 = arith.addf %50, %54 : vector<184x128xf32>
    %c0_59 = arith.constant 0 : index
    %c0_60 = arith.constant 0 : index
    %56 = vector.load %arg3[%c0_59, %c0_60] : memref<1x128xf32, #tpu.memory_space<vmem>>, vector<1x128xf32>
    %57 = vector.broadcast %56 : vector<1x128xf32> to vector<184x128xf32>
    %58 = arith.addf %55, %57 : vector<184x128xf32>
    %59 = arith.truncf %58 : vector<184x128xf32> to vector<184x128xbf16>
    %c8_61 = arith.constant 8 : index
    %c0_62 = arith.constant 0 : index
    %60 = vector.load %arg8[%c8_61, %c0_62] : memref<200x128xbf16, #tpu.memory_space<vmem>>, vector<184x128xbf16>
    tpu.vector_store %arg8[%c8_61, %c0_62], %59 {strides = array<i32>} : memref<200x128xbf16, #tpu.memory_space<vmem>>, vector<184x128xbf16>,
    %cst_63 = arith.constant 0.000000e+00 : bf16
    %61 = vector.broadcast %cst_63 : bf16 to vector<8x128xbf16>
    %c0_64 = arith.constant 0 : index
    %c0_65 = arith.constant 0 : index
    %62 = vector.load %arg8[%c0_64, %c0_65] : memref<200x128xbf16, #tpu.memory_space<vmem>>, vector<8x128xbf16>
    tpu.vector_store %arg8[%c0_64, %c0_65], %61 {strides = array<i32>} : memref<200x128xbf16, #tpu.memory_space<vmem>>, vector<8x128xbf16>,
    %cst_66 = arith.constant 0.000000e+00 : bf16
    %63 = vector.broadcast %cst_66 : bf16 to vector<8x128xbf16>
    %c24_67 = arith.constant 24 : index
    %c0_68 = arith.constant 0 : index
    %64 = vector.load %arg8[%c24_67, %c0_68] : memref<200x128xbf16, #tpu.memory_space<vmem>>, vector<8x128xbf16>
    tpu.vector_store %arg8[%c24_67, %c0_68], %63 {strides = array<i32>} : memref<200x128xbf16, #tpu.memory_space<vmem>>, vector<8x128xbf16>,
    %cst_69 = arith.constant 0.000000e+00 : bf16
    %65 = vector.broadcast %cst_69 : bf16 to vector<8x128xbf16>
    %c48_70 = arith.constant 48 : index
    %c0_71 = arith.constant 0 : index
    %66 = vector.load %arg8[%c48_70, %c0_71] : memref<200x128xbf16, #tpu.memory_space<vmem>>, vector<8x128xbf16>
    tpu.vector_store %arg8[%c48_70, %c0_71], %65 {strides = array<i32>} : memref<200x128xbf16, #tpu.memory_space<vmem>>, vector<8x128xbf16>,
    %cst_72 = arith.constant 0.000000e+00 : bf16
    %67 = vector.broadcast %cst_72 : bf16 to vector<8x128xbf16>
    %c72_73 = arith.constant 72 : index
    %c0_74 = arith.constant 0 : index
    %68 = vector.load %arg8[%c72_73, %c0_74] : memref<200x128xbf16, #tpu.memory_space<vmem>>, vector<8x128xbf16>
    tpu.vector_store %arg8[%c72_73, %c0_74], %67 {strides = array<i32>} : memref<200x128xbf16, #tpu.memory_space<vmem>>, vector<8x128xbf16>,
    %cst_75 = arith.constant 0.000000e+00 : bf16
    %69 = vector.broadcast %cst_75 : bf16 to vector<8x128xbf16>
    %c96_76 = arith.constant 96 : index
    %c0_77 = arith.constant 0 : index
    %70 = vector.load %arg8[%c96_76, %c0_77] : memref<200x128xbf16, #tpu.memory_space<vmem>>, vector<8x128xbf16>
    tpu.vector_store %arg8[%c96_76, %c0_77], %69 {strides = array<i32>} : memref<200x128xbf16, #tpu.memory_space<vmem>>, vector<8x128xbf16>,
    %cst_78 = arith.constant 0.000000e+00 : bf16
    %71 = vector.broadcast %cst_78 : bf16 to vector<8x128xbf16>
    %c120_79 = arith.constant 120 : index
    %c0_80 = arith.constant 0 : index
    %72 = vector.load %arg8[%c120_79, %c0_80] : memref<200x128xbf16, #tpu.memory_space<vmem>>, vector<8x128xbf16>
    tpu.vector_store %arg8[%c120_79, %c0_80], %71 {strides = array<i32>} : memref<200x128xbf16, #tpu.memory_space<vmem>>, vector<8x128xbf16>,
    %cst_81 = arith.constant 0.000000e+00 : bf16
    %73 = vector.broadcast %cst_81 : bf16 to vector<8x128xbf16>
    %c144_82 = arith.constant 144 : index
    %c0_83 = arith.constant 0 : index
    %74 = vector.load %arg8[%c144_82, %c0_83] : memref<200x128xbf16, #tpu.memory_space<vmem>>, vector<8x128xbf16>
    tpu.vector_store %arg8[%c144_82, %c0_83], %73 {strides = array<i32>} : memref<200x128xbf16, #tpu.memory_space<vmem>>, vector<8x128xbf16>,
    %cst_84 = arith.constant 0.000000e+00 : bf16
    %75 = vector.broadcast %cst_84 : bf16 to vector<8x128xbf16>
    %c168_85 = arith.constant 168 : index
    %c0_86 = arith.constant 0 : index
    %76 = vector.load %arg8[%c168_85, %c0_86] : memref<200x128xbf16, #tpu.memory_space<vmem>>, vector<8x128xbf16>
    tpu.vector_store %arg8[%c168_85, %c0_86], %75 {strides = array<i32>} : memref<200x128xbf16, #tpu.memory_space<vmem>>, vector<8x128xbf16>,
    %cst_87 = arith.constant 0.000000e+00 : bf16
    %77 = vector.broadcast %cst_87 : bf16 to vector<8x128xbf16>
    %c192_88 = arith.constant 192 : index
    %c0_89 = arith.constant 0 : index
    %78 = vector.load %arg8[%c192_88, %c0_89] : memref<200x128xbf16, #tpu.memory_space<vmem>>, vector<8x128xbf16>
    tpu.vector_store %arg8[%c192_88, %c0_89], %77 {strides = array<i32>} : memref<200x128xbf16, #tpu.memory_space<vmem>>, vector<8x128xbf16>,
    %c7_90 = arith.constant 7 : index
    %c0_91 = arith.constant 0 : index
    %79 = vector.load %arg8[%c7_90, %c0_91] : memref<200x128xbf16, #tpu.memory_space<vmem>>, vector<184x128xbf16>
    %c0_92 = arith.constant 0 : index
    %c0_93 = arith.constant 0 : index
    %c0_94 = arith.constant 0 : index
    %80 = vector.load %arg4[%c0_92, %c0_93, %c0_94] : memref<3x128x128xbf16, #tpu.memory_space<vmem>>, vector<1x128x128xbf16>
    %81 = vector.shape_cast %80 : vector<1x128x128xbf16> to vector<128x128xbf16>
    %cst_95 = arith.constant dense<0.000000e+00> : vector<184x128xf32>
    %82 = tpu.matmul %79, %81, %cst_95 {dimension_numbers = #tpu.dot_dimension_numbers<[1], [0], [0], [1], [0, 0, 1, 1], [], []>} : vector<184x128xbf16>, vector<128x128xbf16>, vector<184x128xf32> -> vector<184x128xf32>
    %c8_96 = arith.constant 8 : index
    %c0_97 = arith.constant 0 : index
    %83 = vector.load %arg8[%c8_96, %c0_97] : memref<200x128xbf16, #tpu.memory_space<vmem>>, vector<184x128xbf16>
    %c1_98 = arith.constant 1 : index
    %c0_99 = arith.constant 0 : index
    %c0_100 = arith.constant 0 : index
    %84 = vector.load %arg4[%c1_98, %c0_99, %c0_100] : memref<3x128x128xbf16, #tpu.memory_space<vmem>>, vector<1x128x128xbf16>
    %85 = vector.shape_cast %84 : vector<1x128x128xbf16> to vector<128x128xbf16>
    %cst_101 = arith.constant dense<0.000000e+00> : vector<184x128xf32>
    %86 = tpu.matmul %83, %85, %cst_101 {dimension_numbers = #tpu.dot_dimension_numbers<[1], [0], [0], [1], [0, 0, 1, 1], [], []>} : vector<184x128xbf16>, vector<128x128xbf16>, vector<184x128xf32> -> vector<184x128xf32>
    %87 = arith.addf %82, %86 : vector<184x128xf32>
    %c9_102 = arith.constant 9 : index
    %c0_103 = arith.constant 0 : index
    %88 = vector.load %arg8[%c9_102, %c0_103] : memref<200x128xbf16, #tpu.memory_space<vmem>>, vector<184x128xbf16>
    %c2_104 = arith.constant 2 : index
    %c0_105 = arith.constant 0 : index
    %c0_106 = arith.constant 0 : index
    %89 = vector.load %arg4[%c2_104, %c0_105, %c0_106] : memref<3x128x128xbf16, #tpu.memory_space<vmem>>, vector<1x128x128xbf16>
    %90 = vector.shape_cast %89 : vector<1x128x128xbf16> to vector<128x128xbf16>
    %cst_107 = arith.constant dense<0.000000e+00> : vector<184x128xf32>
    %91 = tpu.matmul %88, %90, %cst_107 {dimension_numbers = #tpu.dot_dimension_numbers<[1], [0], [0], [1], [0, 0, 1, 1], [], []>} : vector<184x128xbf16>, vector<128x128xbf16>, vector<184x128xf32> -> vector<184x128xf32>
    %92 = arith.addf %87, %91 : vector<184x128xf32>
    %c0_108 = arith.constant 0 : index
    %c0_109 = arith.constant 0 : index
    %93 = vector.load %arg5[%c0_108, %c0_109] : memref<1x128xf32, #tpu.memory_space<vmem>>, vector<1x128xf32>
    %94 = vector.broadcast %93 : vector<1x128xf32> to vector<184x128xf32>
    %95 = arith.addf %92, %94 : vector<184x128xf32>
    %96 = vector.extract_strided_slice %95 {offsets = [0, 0], sizes = [16, 128], strides = [1, 1]} : vector<184x128xf32> to vector<16x128xf32>
    %c0_110 = arith.constant 0 : index
    %c0_111 = arith.constant 0 : index
    %c0_112 = arith.constant 0 : index
    %97 = vector.load %arg6[%c0_110, %c0_111, %c0_112] : memref<8x16x128xf32, #tpu.memory_space<vmem>>, vector<1x16x128xf32>
    %98 = vector.shape_cast %97 : vector<1x16x128xf32> to vector<16x128xf32>
    %99 = vector.shape_cast %96 : vector<16x128xf32> to vector<1x16x128xf32>
    tpu.vector_store %arg6[%c0_110, %c0_111, %c0_112], %99 {strides = array<i32>} : memref<8x16x128xf32, #tpu.memory_space<vmem>>, vector<1x16x128xf32>,
    %100 = vector.extract_strided_slice %95 {offsets = [24, 0], sizes = [16, 128], strides = [1, 1]} : vector<184x128xf32> to vector<16x128xf32>
    %c1_113 = arith.constant 1 : index
    %c0_114 = arith.constant 0 : index
    %c0_115 = arith.constant 0 : index
    %101 = vector.load %arg6[%c1_113, %c0_114, %c0_115] : memref<8x16x128xf32, #tpu.memory_space<vmem>>, vector<1x16x128xf32>
    %102 = vector.shape_cast %101 : vector<1x16x128xf32> to vector<16x128xf32>
    %103 = vector.shape_cast %100 : vector<16x128xf32> to vector<1x16x128xf32>
    tpu.vector_store %arg6[%c1_113, %c0_114, %c0_115], %103 {strides = array<i32>} : memref<8x16x128xf32, #tpu.memory_space<vmem>>, vector<1x16x128xf32>,
    %104 = vector.extract_strided_slice %95 {offsets = [48, 0], sizes = [16, 128], strides = [1, 1]} : vector<184x128xf32> to vector<16x128xf32>
    %c2_116 = arith.constant 2 : index
    %c0_117 = arith.constant 0 : index
    %c0_118 = arith.constant 0 : index
    %105 = vector.load %arg6[%c2_116, %c0_117, %c0_118] : memref<8x16x128xf32, #tpu.memory_space<vmem>>, vector<1x16x128xf32>
    %106 = vector.shape_cast %105 : vector<1x16x128xf32> to vector<16x128xf32>
    %107 = vector.shape_cast %104 : vector<16x128xf32> to vector<1x16x128xf32>
    tpu.vector_store %arg6[%c2_116, %c0_117, %c0_118], %107 {strides = array<i32>} : memref<8x16x128xf32, #tpu.memory_space<vmem>>, vector<1x16x128xf32>,
    %108 = vector.extract_strided_slice %95 {offsets = [72, 0], sizes = [16, 128], strides = [1, 1]} : vector<184x128xf32> to vector<16x128xf32>
    %c3_119 = arith.constant 3 : index
    %c0_120 = arith.constant 0 : index
    %c0_121 = arith.constant 0 : index
    %109 = vector.load %arg6[%c3_119, %c0_120, %c0_121] : memref<8x16x128xf32, #tpu.memory_space<vmem>>, vector<1x16x128xf32>
    %110 = vector.shape_cast %109 : vector<1x16x128xf32> to vector<16x128xf32>
    %111 = vector.shape_cast %108 : vector<16x128xf32> to vector<1x16x128xf32>
    tpu.vector_store %arg6[%c3_119, %c0_120, %c0_121], %111 {strides = array<i32>} : memref<8x16x128xf32, #tpu.memory_space<vmem>>, vector<1x16x128xf32>,
    %112 = vector.extract_strided_slice %95 {offsets = [96, 0], sizes = [16, 128], strides = [1, 1]} : vector<184x128xf32> to vector<16x128xf32>
    %c4_122 = arith.constant 4 : index
    %c0_123 = arith.constant 0 : index
    %c0_124 = arith.constant 0 : index
    %113 = vector.load %arg6[%c4_122, %c0_123, %c0_124] : memref<8x16x128xf32, #tpu.memory_space<vmem>>, vector<1x16x128xf32>
    %114 = vector.shape_cast %113 : vector<1x16x128xf32> to vector<16x128xf32>
    %115 = vector.shape_cast %112 : vector<16x128xf32> to vector<1x16x128xf32>
    tpu.vector_store %arg6[%c4_122, %c0_123, %c0_124], %115 {strides = array<i32>} : memref<8x16x128xf32, #tpu.memory_space<vmem>>, vector<1x16x128xf32>,
    %116 = vector.extract_strided_slice %95 {offsets = [120, 0], sizes = [16, 128], strides = [1, 1]} : vector<184x128xf32> to vector<16x128xf32>
    %c5_125 = arith.constant 5 : index
    %c0_126 = arith.constant 0 : index
    %c0_127 = arith.constant 0 : index
    %117 = vector.load %arg6[%c5_125, %c0_126, %c0_127] : memref<8x16x128xf32, #tpu.memory_space<vmem>>, vector<1x16x128xf32>
    %118 = vector.shape_cast %117 : vector<1x16x128xf32> to vector<16x128xf32>
    %119 = vector.shape_cast %116 : vector<16x128xf32> to vector<1x16x128xf32>
    tpu.vector_store %arg6[%c5_125, %c0_126, %c0_127], %119 {strides = array<i32>} : memref<8x16x128xf32, #tpu.memory_space<vmem>>, vector<1x16x128xf32>,
    %120 = vector.extract_strided_slice %95 {offsets = [144, 0], sizes = [16, 128], strides = [1, 1]} : vector<184x128xf32> to vector<16x128xf32>
    %c6_128 = arith.constant 6 : index
    %c0_129 = arith.constant 0 : index
    %c0_130 = arith.constant 0 : index
    %121 = vector.load %arg6[%c6_128, %c0_129, %c0_130] : memref<8x16x128xf32, #tpu.memory_space<vmem>>, vector<1x16x128xf32>
    %122 = vector.shape_cast %121 : vector<1x16x128xf32> to vector<16x128xf32>
    %123 = vector.shape_cast %120 : vector<16x128xf32> to vector<1x16x128xf32>
    tpu.vector_store %arg6[%c6_128, %c0_129, %c0_130], %123 {strides = array<i32>} : memref<8x16x128xf32, #tpu.memory_space<vmem>>, vector<1x16x128xf32>,
    %124 = vector.extract_strided_slice %95 {offsets = [168, 0], sizes = [16, 128], strides = [1, 1]} : vector<184x128xf32> to vector<16x128xf32>
    %c7_131 = arith.constant 7 : index
    %c0_132 = arith.constant 0 : index
    %c0_133 = arith.constant 0 : index
    %125 = vector.load %arg6[%c7_131, %c0_132, %c0_133] : memref<8x16x128xf32, #tpu.memory_space<vmem>>, vector<1x16x128xf32>
    %126 = vector.shape_cast %125 : vector<1x16x128xf32> to vector<16x128xf32>
    %127 = vector.shape_cast %124 : vector<16x128xf32> to vector<1x16x128xf32>
    tpu.vector_store %arg6[%c7_131, %c0_132, %c0_133], %127 {strides = array<i32>} : memref<8x16x128xf32, #tpu.memory_space<vmem>>, vector<1x16x128xf32>,
    return
  }
  func.func @transform_0(%arg0: i32) -> (i32, i32, i32) {
    %c0_i32 = arith.constant 0 : i32
    %c0_i32_0 = arith.constant 0 : i32
    %c0_i32_1 = arith.constant 0 : i32
    return %arg0, %c0_i32, %c0_i32_0 : i32, i32, i32
  }
  func.func @transform_1(%arg0: i32) -> (i32, i32, i32) {
    %c0_i32 = arith.constant 0 : i32
    %c0_i32_0 = arith.constant 0 : i32
    %c0_i32_1 = arith.constant 0 : i32
    %c0_i32_2 = arith.constant 0 : i32
    return %c0_i32, %c0_i32_0, %c0_i32_1 : i32, i32, i32
  }
  func.func @transform_2(%arg0: i32) -> (i32, i32) {
    %c0_i32 = arith.constant 0 : i32
    %c0_i32_0 = arith.constant 0 : i32
    %c0_i32_1 = arith.constant 0 : i32
    return %c0_i32, %c0_i32_0 : i32, i32
  }
  func.func @transform_3(%arg0: i32) -> (i32, i32, i32) {
    %c0_i32 = arith.constant 0 : i32
    %c0_i32_0 = arith.constant 0 : i32
    %c0_i32_1 = arith.constant 0 : i32
    %c0_i32_2 = arith.constant 0 : i32
    return %c0_i32, %c0_i32_0, %c0_i32_1 : i32, i32, i32
  }
  func.func @transform_4(%arg0: i32) -> (i32, i32) {
    %c0_i32 = arith.constant 0 : i32
    %c0_i32_0 = arith.constant 0 : i32
    %c0_i32_1 = arith.constant 0 : i32
    return %c0_i32, %c0_i32_0 : i32, i32
  }
  func.func @transform_5(%arg0: i32) -> (i32, i32, i32) {
    %c0_i32 = arith.constant 0 : i32
    %c0_i32_0 = arith.constant 0 : i32
    %c0_i32_1 = arith.constant 0 : i32
    return %arg0, %c0_i32, %c0_i32_0 : i32, i32, i32
  }
}

</mosaic_0001>

<bundles_post_ra>
// kernel: tpu_custom_call.1
= control target key start
LH: loop header
LB: loop body
LE: loop exit
PB: predicated region body
PF: predicated region fallthrough
CT: control target
= control target key end

     0   :  { %10 = vsyncpa [#allocation5], 0  ;;  %s4301_s0 = inlined_call_operand.hbm [shape: bf16[16,16,64], index: 0, kind: input, shape index: {}]   ;;  %s4302_s1 = inlined_call_operand.hbm [shape: bf16[3,64,128], index: 1, kind: input, shape index: {}]   ;;  %s4303_s2 = inlined_call_operand.vmem [shape: f32[1,128], index: 2, kind: input, shape index: {}]   ;;  %s4304_s3 = inlined_call_operand.hbm [shape: bf16[3,128,128], index: 3, kind: input, shape index: {}]   ;;  %s4305_s4 = inlined_call_operand.vmem [shape: f32[1,128], index: 4, kind: input, shape index: {}]   ;;  %s4306_s5 = inlined_call_operand.hbm [shape: f32[16,16,128], index: 5, kind: output, shape index: {}]  }
   0x1   :  { %12 = vsyncpa [#allocation5 + $0x1], 0 }
   0x2   :  { %13 = vsyncpa [#allocation8], 0 }
   0x3   :  { %14 = vsyncpa [#allocation6], 0 }
   0x4   :  { %16 = vsyncpa [#allocation6 + $0x1], 0  ;;  %s3679_s18 = smov 0   ;;  %s3681_s19 = smov 0  }
   0x5   :  { %s3683_s20 = smov 0   ;;  %s3685_s21 = smov 0  }
   0x6 LB: > { %s3700_s22 = sadd.s32 4294967295, %s3638_s21   ;;  %s2622_s23 = sadd.s32 4294967294, %s3638_s21   ;;  %s3638_s21 = sphi %s3685_s21, %s4326_s21   ;;  %s3634_s20 = sphi %s3683_s20, %s4325_s20   ;;  %s3630_s19 = sphi %s3681_s19, %s4324_s19   ;;  %s3626_s18 = sphi %s3679_s18, %s4323_s18  }
   0x7   : > { %p42_p0 = scmp.ne.s32.totalorder %s3630_s19, %s3626_s18  ;;  %p4307_p1 = scmp.eq.s32.totalorder %s3700_s22, 0 }
   0x8   : > { %p156_p3 = scmp.eq.s32.totalorder %s2622_s23, 1  ;;  %p2623_p5 = scmp.ge.s32.totalorder %s3638_s21, 1 }
   0x9   : > { %p3709_p4 = por %p4307_p1, %p42_p0  ;;  %p163_p7 = scmp.lt.s32.totalorder %s3638_s21, 3 }
   0xa   : > { %p3714_p6 = por %p156_p3, %p42_p0  ;;  %s3640_s27 = smov [#allocation7]  }
   0xb   : > { %s4310_s24 = scalar_select %p3709_p4, 1, 0 }
   0xc   : > { %s4311_s25 = scalar_select %p3714_p6, 1, 0 }
   0xd   : > { %p3719_p8 = pnand %p2623_p5, %p163_p7  ;;  %s175_s28 = sshll.u32 %s3640_s27, 4  ;;  %s3723_s28 = int_to_ptr.vmem [resolvable:$true] %s175_s28 }
   0xe   : > { %s3641_s30 = smov [#allocation9]   ;;  %s3482_s9 = scalar_lea.hbm %s4302_s1, 1536 }
   0xf   : > { %p3324_p9 = pneg %p3719_p8  ;;  %s191_s6 = sshll.u32 %s3641_s30, 4  ;;  %s3734_s6 = int_to_ptr.vmem [resolvable:$true] %s191_s6 }
  0x10   : > { %p3483_p12 = scmp.ne.s32.totalorder %s4302_s1, %s3482_s9  ;;  %p3489_p5 = scmp.lt.u32.totalorder %s3482_s9, %s4302_s1 }
  0x11   : > { %p3730_p11 = pnand %p3324_p9, %p4307_p1 }
  0x13   : > { %p3484_p13 = pneg %p3730_p11 }
  0x15   : > { %p3485_p0 = pnand %p3484_p13, %p3483_p12 }
  0x17   : > { %p3486_p3 = pneg %p3485_p0 }
  0x19   : > { %p3491_p7 = pnand %p3489_p5, %p3486_p3 }
  0x1b   : > { %3494 = shalt.err (!%p3491_p7)
}
  0x1c   : > { %s3495_s14 = scalar_lea.vmem %s3723_s28, 1536  ;;  %p3503_p2 = scmp.lt.s32.totalorder %s3723_s28, %s3723_s28 }
  0x1d   : > { %p3496_p9 = scmp.ne.s32.totalorder %s3723_s28, %s3495_s14  ;;  %p3504_p12 = scmp.lt.s32.totalorder %s3495_s14, %s3495_s14 }
  0x1f   : > { %p3498_p10 = pnand %p3496_p9, %p3484_p13  ;;  %p3505_p0 = por %p3504_p12, %p3503_p2 }
  0x21   : > { %p3499_p1 = pneg %p3498_p10 }
  0x23   : > { %p3506_p6 = pnand %p3505_p0, %p3499_p1 }
  0x25   : > { %3509 = shalt.err (!%p3506_p6)
}
  0x26   : > { %s3642_s15 = smov 64   ;;  %s3643_s16 = smov 4  }
  0x27   : > { %3327 = dma.hbm_to_vmem [thread:$0]  (!%p3730_p11), %s4302_s1, 1536, %s3723_s28, [#allocation8], %s3642_s15, %s3642_s15, %s3643_s16  }
  0x28   : > { %s3510_s7 = scalar_lea.hbm %s4304_s3, 3072 }
  0x29   : > { %p3511_p1 = scmp.ne.s32.totalorder %s4304_s3, %s3510_s7  ;;  %p3517_p10 = scmp.lt.u32.totalorder %s3510_s7, %s4304_s3 }
  0x2b   : > { %p3513_p2 = pnand %p3511_p1, %p3484_p13 }
  0x2d   : > { %p3514_p6 = pneg %p3513_p2 }
  0x2f   : > { %p3519_p3 = pnand %p3517_p10, %p3514_p6 }
  0x31   : > { %3522 = shalt.err (!%p3519_p3)
}
  0x32   : > { %s3523_s28 = scalar_lea.vmem %s3734_s6, 3072  ;;  %p3531_p12 = scmp.lt.s32.totalorder %s3734_s6, %s3734_s6 }
  0x33   : > { %p3524_p5 = scmp.ne.s32.totalorder %s3734_s6, %s3523_s28  ;;  %p3532_p0 = scmp.lt.s32.totalorder %s3523_s28, %s3523_s28 }
  0x35   : > { %p3526_p7 = pnand %p3524_p5, %p3484_p13  ;;  %p3533_p1 = por %p3532_p0, %p3531_p12 }
  0x37   : > { %p3527_p9 = pneg %p3526_p7 }
  0x39   : > { %p3534_p2 = pnand %p3533_p1, %p3527_p9 }
  0x3b   : > { %3537 = shalt.err (!%p3534_p2)
}
  0x3c   : > { %3330 = dma.hbm_to_vmem [thread:$0]  (!%p3730_p11), %s4304_s3, 3072, %s3734_s6, [#allocation8], %s3642_s15, %s3642_s15, %s3643_s16  }
  0x3d   : > { %s3795_s29 = sadd.s32 1, %s3638_s21   ;;  %s29_s14 = sadd.s32 1, %s3634_s20 }
  0x3e   : > { %s26_s17 = ssub.s32 %s3638_s21, %s3795_s29  ;;  %p36_p13 = scmp.ne.s32.totalorder %s3634_s20, %s3630_s19 }
  0x3f   : > { %p27_p6 = scmp.eq.s32.totalorder %s26_s17, 0  ;;  %p37_p10 = scmp.eq.s32.totalorder %s3638_s21, 0 }
  0x40   : > { %p4314_p3 = scmp.eq.s32.totalorder %s3700_s22, 1  ;;  %p3341_p7 = scmp.lt.s32.totalorder %s3638_s21, 2 }
  0x41   : > { %s3811_s27 = scalar_select %p27_p6, %s3634_s20, %s29_s14  }
  0x42   : > { %p3805_p5 = por %p4314_p3, %p36_p13  ;;  %p38_p9 = por %p37_p10, %p36_p13 }
  0x43   : > { %s208_s30 = sand.u32 1, %s3634_s20   ;;  %s2840_s6 = sshll.u32 %s3638_s21, 10 }
  0x44   : > { %s4315_s23 = scalar_select %p3805_p5, 1, 0 }
  0x45   : > { %s2627_s7 = sshll.u32 %s208_s30, 6  ;;  %s3818_s10 = scalar_lea.hbm %s4301_s0, %s2840_s6 }
  0x46   : > { %s212_s11 = scalar_lea.vmem [#allocation4], %s2627_s7  ;;  %p3822_p11 = pnand %p3341_p7, %p38_p9 }
  0x47   : > { %s220_s28 = sshll.u32 %s212_s11, 4  ;;  %s3826_s13 = scalar_lea.sflag [#allocation5], %s208_s30  ;;  %s3820_s28 = int_to_ptr.vmem [resolvable:$true] %s220_s28 }
  0x48   : > { %s3538_s14 = scalar_lea.hbm %s3818_s10, 1024  ;;  %p3540_p0 = pneg %p3822_p11 }
  0x49   : > { %p3539_p12 = scmp.ne.s32.totalorder %s3818_s10, %s3538_s14  ;;  %s3543_s6 = scalar_lea.hbm %s4301_s0, 2048 }
  0x4a   : > { %p3544_p13 = scmp.lt.u32.totalorder %s3818_s10, %s4301_s0  ;;  %p3545_p6 = scmp.lt.u32.totalorder %s3543_s6, %s3538_s14 }
  0x4b   : > { %p3541_p1 = pnand %p3540_p0, %p3539_p12  ;;  %p3547_p3 = scmp.lt.u32.totalorder %s3538_s14, %s3818_s10 }
  0x4c   : > { %p3546_p10 = por %p3545_p6, %p3544_p13 }
  0x4d   : > { %p3542_p2 = pneg %p3541_p1 }
  0x4e   : > { %p3548_p7 = por %p3547_p3, %p3546_p10 }
  0x50   : > { %p3549_p9 = pnand %p3548_p7, %p3542_p2 }
  0x52   : > { %3552 = shalt.err (!%p3549_p9)
}
  0x53   : > { %s3553_s30 = scalar_lea.vmem %s3820_s28, 1024  ;;  %s3644_s11 = smov [#allocation4]  }
  0x54   : > { %p3554_p12 = scmp.ne.s32.totalorder %s3820_s28, %s3553_s30  ;;  %s3558_s17 = sshll.u32 %s3644_s11, 4  ;;  %s3559_s17 = int_to_ptr.vmem [resolvable:$false] %s3558_s17 }
  0x55   : > { %s3560_s7 = scalar_lea.vmem %s3559_s17, 2048  ;;  %p3561_p4 = scmp.lt.s32.totalorder %s3820_s28, %s3559_s17 }
  0x56   : > { %p3556_p1 = pnand %p3554_p12, %p3540_p0  ;;  %p3562_p13 = scmp.lt.s32.totalorder %s3560_s7, %s3553_s30 }
  0x58   : > { %p3557_p5 = pneg %p3556_p1  ;;  %p3563_p6 = por %p3562_p13, %p3561_p4 }
  0x5a   : > { %p3564_p10 = pnand %p3563_p6, %p3557_p5 }
  0x5c   : > { %3567 = shalt.err (!%p3564_p10)
}
  0x5d   : > { %3334 = dma.hbm_to_vmem [thread:$0]  (!%p3822_p11), %s3818_s10, 1024, %s3820_s28, %s3826_s13, %s3642_s15, %s3642_s15, %s3643_s16  }
  0x5e   : > { %232 = sbr.rel (%p3719_p8) target bundleno = 826 (0x33a), region = 40  ;;  %s3860_s14 = sand.u32 (!%p3719_p8), 1, %s3630_s19  }
  0x5f   : > { %s2632_s6 = sshll.u32 (!%p3719_p8), %s3860_s14, 6  ;;  %s235_s8 = scalar_lea.sflag (!%p3719_p8), [#allocation5], %s3860_s14 }
  0x60   : > { %s3864_s9 = scalar_lea.vmem (!%p3719_p8), [#allocation4], %s2632_s6  ;;  %p4317_p4 = scmp.ne.s32.totalorder (!%p3719_p8), %s4310_s24, 0 }
  0x65   : > { %3613 = dma.done.wait (%p4317_p4), %s235_s8, 1024  }
  0x66   : > { %3615 = vsyncadd (%p4317_p4), %s235_s8, 4294966272  ;;  %p4318_p5 = scmp.eq.s32.totalorder %s3700_s22, 0 }
  0x68   : > { %3617 = dma.done.wait (%p4318_p5), [#allocation8], 4608   ;;  %p4319_p8 = pmov %p4318_p5 }
  0x69   : > { %vm276_vm0 = vcmask 519168   ;;  %v3645_v0 = vmov 0   ;;  %v3384_v1 = vld [vmem:[#allocation7 + $0x20] sm:$0xff]   ;;  %v3385_v2 = vld [vmem:[#allocation7 + $0x28] sm:$0xff]   ;;  %v3386_v3 = vld [vmem:[#allocation7 + $0x30] sm:$0xff]   ;;  %vm448_vm1 = vcmask 523264  }
  0x6a   : > { %3619 = vsyncadd (%p4319_p8), [#allocation8], 4294962688  ;;  %277 = vst.msk [vmem:[#allocation2] sm:$0xf] %vm276_vm0, %v3645_v0  ;;  %3040 = vmatprep.subr.bf16.mxu0 %v3384_v1  ;;  %v278_v4 = vld [vmem:[%s3864_s9] sm:$0xf] }
  0x6b   : > { %282 = vst.msk [vmem:[#allocation2 + $0xc] sm:$0xf] %vm276_vm0, %v3645_v0  ;;  %288 = vst.msk [vmem:[#allocation2 + $0x18] sm:$0xf] %vm276_vm0, %v3645_v0  ;;  %3041 = vmatpush3.bf16.msra.mxu0 %v3384_v1  ;;  %v279_v5 = vld [vmem:[%s3864_s9 + $0x4] sm:$0xf] }
  0x6c   : > { %294 = vst.msk [vmem:[#allocation2 + $0x24] sm:$0xf] %vm276_vm0, %v3645_v0  ;;  %300 = vst.msk [vmem:[#allocation2 + $0x30] sm:$0xf] %vm276_vm0, %v3645_v0  ;;  %3042 = vmatprep.subr.bf16.mxu0 %v3385_v2  ;;  %v2636_v6 = vld [vmem:[%s3864_s9 + $0x8] sm:$0xf] }
  0x6d   : > { %306 = vst.msk [vmem:[#allocation2 + $0x3c] sm:$0xf] %vm276_vm0, %v3645_v0  ;;  %312 = vst.msk [vmem:[#allocation2 + $0x48] sm:$0xf] %vm276_vm0, %v3645_v0  ;;  %v2637_v7 = vld [vmem:[%s3864_s9 + $0xc] sm:$0xf] }
  0x6e   : > { %318 = vst.msk [vmem:[#allocation2 + $0x54] sm:$0xf] %vm276_vm0, %v3645_v0  ;;  %324 = vst.msk [vmem:[#allocation2 + $0x60] sm:$0xf] %vm276_vm0, %v3645_v0  ;;  %v2638_v8 = vld [vmem:[%s3864_s9 + $0x10] sm:$0xf] }
  0x6f   : > { %1469 = vst [vmem:[#allocation3] sm:$0xf] %v3645_v0  ;;  %1477 = vst [vmem:[#allocation3 + $0x60] sm:$0xf] %v3645_v0  ;;  %3043 = vmatpush3.bf16.msra.mxu0 %v3385_v2  ;;  %v2639_v9 = vld [vmem:[%s3864_s9 + $0x14] sm:$0xf] }
  0x70   : > { %280 = vst.msk [vmem:[#allocation2 + $0x4] sm:$0xf] %vm276_vm0, %v278_v4  ;;  %281 = vst.msk [vmem:[#allocation2 + $0x8] sm:$0xf] %vm276_vm0, %v279_v5  ;;  %3044 = vmatprep.subr.bf16.mxu0 %v3386_v3  ;;  %v3387_v10 = vld [vmem:[#allocation7 + $0x38] sm:$0xff]   ;;  %v3393_v14 = vld [vmem:[#allocation7] sm:$0xff]  }
  0x71   : > { %286 = vst.msk [vmem:[#allocation2 + $0x10] sm:$0xf] %vm276_vm0, %v2636_v6  ;;  %287 = vst.msk [vmem:[#allocation2 + $0x14] sm:$0xf] %vm276_vm0, %v2637_v7  ;;  %v2640_v12 = vld [vmem:[%s3864_s9 + $0x18] sm:$0xf] }
  0x72   : > { %292 = vst.msk [vmem:[#allocation2 + $0x1c] sm:$0xf] %vm276_vm0, %v2638_v8  ;;  %293 = vst.msk [vmem:[#allocation2 + $0x20] sm:$0xf] %vm276_vm0, %v2639_v9  ;;  %v3906_v11 = vld [vmem:[#allocation2 + $0xc] sm:$0xf] }
  0x73   : > { %v2641_v13 = vld [vmem:[%s3864_s9 + $0x1c] sm:$0xf]  ;;  %298 = vst.msk [vmem:[#allocation2 + $0x28] sm:$0xf] %vm276_vm0, %v2640_v12  ;;  %v2642_v15 = vld [vmem:[%s3864_s9 + $0x20] sm:$0xf]  ;;  %3045 = vmatpush3.bf16.msra.mxu0 %v3386_v3 }
  0x74   : > { %299 = vst.msk [vmem:[#allocation2 + $0x2c] sm:$0xf] %vm276_vm0, %v2641_v13  ;;  %v2643_v16 = vld [vmem:[%s3864_s9 + $0x24] sm:$0xf]  ;;  %v3914_v17 = vld [vmem:[#allocation2 + $0x18] sm:$0xf]  ;;  %3046 = vmatprep.subr.bf16.mxu0 %v3387_v10 }
  0x75   : > { %304 = vst.msk [vmem:[#allocation2 + $0x34] sm:$0xf] %vm276_vm0, %v2642_v15  ;;  %305 = vst.msk [vmem:[#allocation2 + $0x38] sm:$0xf] %vm276_vm0, %v2643_v16  ;;  %v2644_v18 = vld [vmem:[%s3864_s9 + $0x28] sm:$0xf] }
  0x76   : > { %310 = vst.msk [vmem:[#allocation2 + $0x40] sm:$0xf] %vm276_vm0, %v2644_v18  ;;  %v2645_v25 = vld [vmem:[%s3864_s9 + $0x2c] sm:$0xf]  ;;  %v2646_v26 = vld [vmem:[%s3864_s9 + $0x30] sm:$0xf] }
  0x77   : > { %v326_v19 = vld [vmem:[#allocation2 + $0x4] sm:$0xf]  ;;  %v327_v20 = vld [vmem:[#allocation2 + $0x8] sm:$0xf]  ;;  %3047 = vmatpush3.bf16.msra.mxu0 %v3387_v10  ;;  %311 = vst.msk [vmem:[#allocation2 + $0x44] sm:$0xf] %vm276_vm0, %v2645_v25 }
  0x78   : > { %v329_v21 = vld [vmem:[#allocation2 + $0x10] sm:$0xf]  ;;  %v330_v22 = vld [vmem:[#allocation2 + $0x14] sm:$0xf]  ;;  %v2650_v23 = vcombine.low %v326_v19, %v327_v20  ;;  %316 = vst.msk [vmem:[#allocation2 + $0x4c] sm:$0xf] %vm276_vm0, %v2646_v26  ;;  %3072 = vmatprep.subr.bf16.mxu0 %v3393_v14  ;;  %v2679_v53 = vcombine.low %v327_v20, %v3906_v11 }
  0x79   : > { %v2651_v24 = vcombine.low %v3906_v11, %v329_v21  ;;  %v2652_v27 = vcombine.low %v330_v22, %v3914_v17  ;;  %v3395_v28 = vld [vmem:[#allocation7 + $0x8] sm:$0xff]   ;;  %v2647_v29 = vld [vmem:[%s3864_s9 + $0x34] sm:$0xf]  ;;  %v334_v30 = vld [vmem:[#allocation2 + $0x24] sm:$0xf]  ;;  %v2680_v56 = vcombine.low %v329_v21, %v330_v22  ;;  %s2635_s15 = sshll.u32 %s3860_s14, 7 }
  0x7a   : > { %3048 = vmatprep.mubr.msk.bf16.mxu0 %vm448_vm1, %v2650_v23  ;;  %317 = vst.msk [vmem:[#allocation2 + $0x50] sm:$0xf] %vm276_vm0, %v2647_v29  ;;  %v3400_v31 = vld [vmem:[#allocation7 + $0x10] sm:$0xff]   ;;  %v333_v33 = vld [vmem:[#allocation2 + $0x20] sm:$0xf]  ;;  %v3943_v44 = vld [vmem:[#allocation7 + $0x40] sm:$0xff]  }
  0x7b   : > { %3049 = vmatmul.mubr.msk.bf16.vlgmr.msra.gmra.mrb[0].mxu0 %vm448_vm1, %v2651_v24  ;;  %v332_v32 = vld [vmem:[#allocation2 + $0x1c] sm:$0xf]  ;;  %v335_v34 = vld [vmem:[#allocation2 + $0x28] sm:$0xf]  ;;  %v2648_v35 = vld [vmem:[%s3864_s9 + $0x38] sm:$0xf]  ;;  %v2682_v62 = vcombine.low %v333_v33, %v334_v30 }
  0x7c   : > { %3073 = vmatpush3.bf16.msra.mxu0 %v3393_v14  ;;  %3052 = vmatprep.mubr.msk.bf16.mxu0 %vm448_vm1, %v2652_v27  ;;  %322 = vst.msk [vmem:[#allocation2 + $0x58] sm:$0xf] %vm276_vm0, %v2648_v35  ;;  %v2649_v36 = vld [vmem:[%s3864_s9 + $0x3c] sm:$0xf]  ;;  %v2653_v37 = vcombine.low %v332_v32, %v333_v33  ;;  %v2654_v38 = vcombine.low %v334_v30, %v335_v34  ;;  %v336_v40 = vld [vmem:[#allocation2 + $0x2c] sm:$0xf] }
  0x7d   : > { %3074 = vmatprep.subr.bf16.mxu0 %v3395_v28  ;;  %323 = vst.msk [vmem:[#allocation2 + $0x5c] sm:$0xf] %vm276_vm0, %v2649_v36  ;;  %v3403_v39 = vld [vmem:[#allocation7 + $0x18] sm:$0xff]   ;;  %v3937_v41 = vld [vmem:[#allocation2 + $0x30] sm:$0xf]  ;;  %v2681_v59 = vcombine.low %v3914_v17, %v332_v32  ;;  %v637_v60 = vshrl.u32 %v2679_v53, 16  ;;  %v2683_v2 = vcombine.low %v335_v34, %v336_v40 }
  0x7e   : > { %v3939_v42 = vld [vmem:[#allocation2 + $0x34] sm:$0xf]  ;;  %v3941_v43 = vld [vmem:[#allocation2 + $0x38] sm:$0xf]  ;;  %v2655_v45 = vcombine.low %v336_v40, %v3937_v41  ;;  %v325_v47 = vld [vmem:[#allocation2] sm:$0x8] }
  0x7f   : > { %v2656_v46 = vcombine.low %v3939_v42, %v3941_v43  ;;  %v340_v48 = vld [vmem:[#allocation2 + $0x3c] sm:$0xf]  ;;  %v3951_v49 = vld [vmem:[#allocation2 + $0x40] sm:$0xf]  ;;  %v3953_v50 = vld [vmem:[#allocation2 + $0x44] sm:$0xf]  ;;  %v2678_v52 = vcombine.low %v325_v47, %v326_v19  ;;  %v2684_v35 = vcombine.low %v3937_v41, %v3939_v42 }
  0x80   : > { %3075 = vmatpush3.bf16.msra.mxu0 %v3395_v28  ;;  %v3955_v51 = vld [vmem:[#allocation2 + $0x48] sm:$0xf]  ;;  %v2657_v54 = vcombine.low %v340_v48, %v3951_v49  ;;  %v640_v61 = vshll.u32 %v2679_v53, 16  ;;  %v344_v63 = vld [vmem:[#allocation2 + $0x4c] sm:$0xf]  ;;  %v646_v6 = vshrl.u32 %v2680_v56, 16  ;;  %v2686_v42 = vcombine.low %v3951_v49, %v3953_v50 }
  0x81   : > { %3076 = vmatprep.subr.bf16.mxu0 %v3400_v31  ;;  %v2658_v55 = vcombine.low %v3953_v50, %v3955_v51  ;;  %v629_v57 = vshrl.u32 %v2678_v52, 16  ;;  %v632_v58 = vshll.u32 %v2678_v52, 16  ;;  %v3964_v1 = vld [vmem:[#allocation2 + $0x50] sm:$0xf]  ;;  %v3966_v3 = vld [vmem:[#allocation2 + $0x54] sm:$0xf] }
  0x82   : > { %v649_v7 = vshll.u32 %v2680_v56, 16  ;;  %vm627_vm2 = vsmask.f32 4352  ;;  %v655_v8 = vshrl.u32 %v2681_v59, 16  ;;  %v2659_v9 = vcombine.low %v344_v63, %v3964_v1  ;;  %v3407_v34 = vld [vmem:[#allocation7 + $0x48] sm:$0xff]   ;;  %v3408_v41 = vld [vmem:[#allocation7 + $0x50] sm:$0xff]  }
  0x83   : > { %3053 = vmatmul.mubr.msk.bf16.gmra.mrb[4].mxu0 %vm448_vm1, %v2653_v37  ;;  %v3968_v4 = vld [vmem:[#allocation2 + $0x58] sm:$0xf]  ;;  %v631_v5 = vrot.slane %v629_v57, 3  ;;  %v658_v10 = vshll.u32 %v2681_v59, 16  ;;  %v664_v11 = vshrl.u32 %v2682_v62, 16  ;;  %v667_v12 = vshll.u32 %v2682_v62, 16 }
  0x84   : > { %3056 = vmatprep.mubr.msk.bf16.mxu0 %vm448_vm1, %v2654_v38  ;;  %3077 = vmatpush3.bf16.msra.mxu0 %v3400_v31  ;;  %v634_v13 = vrot.slane %v632_v58, 4  ;;  %v639_v14 = vrot.slane %v637_v60, 3  ;;  %v642_v15 = vrot.slane %v640_v61, 4  ;;  %v2660_v16 = vcombine.low %v3966_v3, %v3968_v4  ;;  %v348_v25 = vld [vmem:[#allocation2 + $0x5c] sm:$0xf]  ;;  %v3409_v57 = vld [vmem:[#allocation7 + $0x58] sm:$0xff]  }
  0x85   : > { %3078 = vmatprep.subr.bf16.mxu0 %v3403_v39  ;;  %v673_v17 = vshrl.u32 %v2683_v2, 16  ;;  %v676_v18 = vshll.u32 %v2683_v2, 16  ;;  %v648_v19 = vrot.slane %v646_v6, 3  ;;  %v651_v20 = vrot.slane %v649_v7, 4  ;;  %s4213_s28 = scalar_lea.vmem [#allocation10], %s2635_s15  ;;  %s2865_s12 = sshll.u32 %s3700_s22, 11 }
  0x86   : > { %v657_v21 = vrot.slane %v655_v8, 3  ;;  %v660_v22 = vrot.slane %v658_v10, 4  ;;  %v666_v23 = vrot.slane %v664_v11, 3  ;;  %v669_v24 = vrot.slane %v667_v12, 4  ;;  %s2530_s13 = sshll.u32 %s4213_s28, 4  ;;  %s4253_s17 = scalar_lea.hbm %s4306_s5, %s2865_s12  ;;  %s4255_s13 = int_to_ptr.vmem [resolvable:$true] %s2530_s13 }
  0x87   : > { %v635_v26 = vor.u32 %v634_v13, %v631_v5  ;;  %v643_v27 = vor.u32 %v642_v15, %v639_v14  ;;  %v675_v28 = vrot.slane %v673_v17, 3  ;;  %v678_v29 = vrot.slane %v676_v18, 4  ;;  %v3410_v18 = vld [vmem:[#allocation2 + $0x4] sm:$0xff]   ;;  %s2516_s22 = scalar_lea.sflag [#allocation6], %s3860_s14  ;;  %s3568_s7 = scalar_lea.vmem %s4255_s13, 2048 }
  0x88   : > { %3079 = vmatpush3.bf16.msra.mxu0 %v3403_v39  ;;  %v2661_v30 = vcombine.low %v348_v25, %v348_v25  ;;  %v652_v32 = vor.u32 %v651_v20, %v648_v19  ;;  %v661_v33 = vor.u32 %v660_v22, %v657_v21  ;;  %v2685_v37 = vcombine.low %v3941_v43, %v340_v48  ;;  %v3411_v21 = vld [vmem:[#allocation2 + $0xc] sm:$0xff]   ;;  %p3569_p11 = scmp.ne.s32.totalorder %s4255_s13, %s3568_s7  ;;  %p4320_p0 = scmp.ne.s32.totalorder %s4315_s23, 0 }
  0x89   : > { %3104 = vmatprep.subr.bf16.mxu0 %v3943_v44  ;;  %v644_v31 = vsel %vm627_vm2, %v635_v26, %v643_v27  ;;  %v670_v39 = vor.u32 %v669_v24, %v666_v23  ;;  %v682_v40 = vshrl.u32 %v2684_v35, 16  ;;  %v700_v59 = vshrl.u32 %v2686_v42, 16  ;;  %s3646_s6 = smov [#allocation10]  }
  0x8a   : > { %v653_v36 = vsel %vm627_vm2, %v643_v27, %v652_v32  ;;  %v662_v38 = vsel %vm627_vm2, %v652_v32, %v661_v33  ;;  %v691_v47 = vshrl.u32 %v2685_v37, 16  ;;  %v694_v52 = vshll.u32 %v2685_v37, 16  ;;  %p3570_p2 = pnand %p3569_p11, %p4320_p0  ;;  %s3572_s8 = sshll.u32 %s3646_s6, 4  ;;  %s3573_s8 = int_to_ptr.vmem [resolvable:$false] %s3572_s8 }
  0x8b   : > { %3057 = vmatmul.mubr.msk.bf16.gmra.mrb[8].mxu0 %vm448_vm1, %v2655_v45  ;;  %v685_v45 = vshll.u32 %v2684_v35, 16  ;;  %v671_v43 = vsel %vm627_vm2, %v661_v33, %v670_v39  ;;  %v684_v48 = vrot.slane %v682_v40, 3  ;;  %v703_v49 = vshll.u32 %v2686_v42, 16  ;;  %s3574_s9 = scalar_lea.vmem %s3573_s8, 4096  ;;  %p3575_p7 = scmp.lt.s32.totalorder %s4255_s13, %s3573_s8 }
  0x8c   : > { %3060 = vmatprep.mubr.msk.bf16.mxu0 %vm448_vm1, %v2656_v46  ;;  %v679_v46 = vor.u32 %v678_v29, %v675_v28  ;;  %v696_v56 = vrot.slane %v694_v52, 4  ;;  %v2689_v5 = vcombine.low %v3968_v4, %v348_v25  ;;  %v1020_v22 = vshll.u32 %v3410_v18, 16  ;;  %v3412_v28 = vld [vmem:[#allocation2 + $0x14] sm:$0xff]   ;;  %p3571_p3 = pneg %p3570_p2  ;;  %p3576_p9 = scmp.lt.s32.totalorder %s3574_s9, %s3568_s7 }
  0x8d   : > { %v687_v53 = vrot.slane %v685_v45, 4  ;;  %v705_v2 = vrot.slane %v703_v49, 4  ;;  %v1018_v25 = vshrl.u32 %v3410_v18, 16  ;;  %v1025_v27 = vshll.u32 %v3411_v21, 16 }
  0x8e   : > { %v1022_v26 = vrot.slane %v1020_v22, 1  ;;  %vm1016_vm3 = vsmask.f32 7424  ;;  %v1033_v32 = vshll.u32 %v3412_v28, 16  ;;  %v1029_v33 = vshrl.u32 %v3411_v21, 16  ;;  %p3577_p12 = por %p3576_p9, %p3575_p7 }
  0x8f   : > { %v688_v58 = vor.u32 %v687_v53, %v684_v48  ;;  %v1037_v35 = vshrl.u32 %v3412_v28, 16 }
  0x90   : > { %v1023_v29 = vor.u32 %v1022_v26, %v1018_v25  ;;  %v1035_v37 = vrot.slane %v1033_v32, 1  ;;  %v3424_v32 = vld [vmem:[#allocation9 + $0x50] sm:$0xff]   ;;  %p3578_p1 = pnand %p3577_p12, %p3571_p3 }
  0x91   : > { %v689_v62 = vsel %vm627_vm2, %v679_v46, %v688_v58 }
  0x92   : > { %v1039_v40 = vor.u32 %v1037_v35, %v1035_v37  ;;  %v3427_v35 = vld [vmem:[#allocation9 + $0x68] sm:$0xff]  }
  0x93   : > { %3061 = vmatmul.mubr.msk.bf16.gmra.mrb[12].mxu0 %vm448_vm1, %v2657_v54  ;;  %v680_v54 = vsel %vm627_vm2, %v670_v39, %v679_v46  ;;  %v3415_v46 = vld [vmem:[#allocation2 + $0x2c] sm:$0xff]  }
  0x94   : > { %3064 = vmatprep.mubr.msk.bf16.mxu0 %vm448_vm1, %v2658_v55  ;;  %v693_v55 = vrot.slane %v691_v47, 3  ;;  %v1057_v48 = vshll.u32 %v3415_v46, 16  ;;  %v1061_v49 = vshrl.u32 %v3415_v46, 16 }
  0x96   : > { %v697_v50 = vor.u32 %v696_v56, %v693_v55  ;;  %v1059_v56 = vrot.slane %v1057_v48, 1 }
  0x98   : > { %v698_v6 = vsel %vm627_vm2, %v688_v58, %v697_v50 }
  0x9b   : > { %3065 = vmatmul.mubr.msk.bf16.gmra.mrb[16].mxu0 %vm448_vm1, %v2659_v9 }
  0x9c   : > { %3068 = vmatprep.mubr.msk.bf16.mxu0 %vm448_vm1, %v2660_v16 }
  0xa3   : > { %3069 = vmatmul.mubr.msk.bf16.gmra.mrb[20].mxu0 %vm448_vm1, %v2661_v30  ;;  %v1027_v30 = vrot.slane %v1025_v27, 1 }
  0xa4   : > { %3080 = vmatprep.mubr.msk.bf16.mxu0 %vm448_vm1, %v644_v31  ;;  %v3413_v31 = vld [vmem:[#allocation2 + $0x1c] sm:$0xff]  }
  0xa5   : > { %v1031_v39 = vor.u32 %v1029_v33, %v1027_v30  ;;  %v3425_v33 = vld [vmem:[#allocation9 + $0x58] sm:$0xff]  }
  0xa7   : > { %v1036_v52 = vsel %vm1016_vm3, %v1031_v39, %v1035_v37  ;;  %v3433_v37 = vld [vmem:[#allocation9 + $0x78] sm:$0xff]  }
  0xab   : > { %3081 = vmatmul.mubr.msk.bf16.vlgmr.msra.gmra.mrb[0].mxu0 %vm448_vm1, %v653_v36  ;;  %v1041_v36 = vshll.u32 %v3413_v31, 16 }
  0xac   : > { %3105 = vmatpush3.bf16.msra.mxu0 %v3943_v44  ;;  %3084 = vmatprep.mubr.msk.bf16.mxu0 %vm448_vm1, %v662_v38  ;;  %v2687_v44 = vcombine.low %v3955_v51, %v344_v63  ;;  %v2688_v51 = vcombine.low %v3964_v1, %v3966_v3  ;;  %v702_v63 = vrot.slane %v700_v59, 3  ;;  %v727_v1 = vshrl.u32 %v2689_v5, 16  ;;  %v3414_v38 = vld [vmem:[#allocation2 + $0x24] sm:$0xff]  }
  0xad   : > { %3106 = vmatprep.subr.bf16.mxu0 %v3407_v34  ;;  %v730_v3 = vshll.u32 %v2689_v5, 16  ;;  %v1043_v45 = vrot.slane %v1041_v36, 1  ;;  %v1049_v47 = vshll.u32 %v3414_v38, 16  ;;  %v3428_v36 = vld [vmem:[#allocation9 + $0x70] sm:$0xff]  }
  0xae   : > { %v709_v60 = vshrl.u32 %v2687_v44, 16  ;;  %v712_v61 = vshll.u32 %v2687_v44, 16  ;;  %v706_v9 = vor.u32 %v705_v2, %v702_v63  ;;  %v718_v10 = vshrl.u32 %v2688_v51, 16  ;;  %v3416_v44 = vld [vmem:[#allocation2 + $0x34] sm:$0xff]  }
  0xaf   : > { %v721_v11 = vshll.u32 %v2688_v51, 16  ;;  %v729_v16 = vrot.slane %v727_v1, 3  ;;  %v732_v17 = vrot.slane %v730_v3, 4  ;;  %v1044_v42 = vsel %vm1016_vm3, %v1039_v40, %v1043_v45  ;;  %v3420_v3 = vld [vmem:[#allocation2 + $0x54] sm:$0xff]  }
  0xb0   : > { %3107 = vmatpush3.bf16.msra.mxu0 %v3407_v34  ;;  %v711_v7 = vrot.slane %v709_v60, 3  ;;  %v714_v8 = vrot.slane %v712_v61, 4  ;;  %v707_v13 = vsel %vm627_vm2, %v697_v50, %v706_v9  ;;  %v720_v14 = vrot.slane %v718_v10, 3 }
  0xb1   : > { %3108 = vmatprep.subr.bf16.mxu0 %v3408_v41  ;;  %v723_v15 = vrot.slane %v721_v11, 4  ;;  %v733_v20 = vor.u32 %v732_v17, %v729_v16  ;;  %v1028_v34 = vsel %vm1016_vm3, %v1023_v29, %v1027_v30  ;;  %v1051_v53 = vrot.slane %v1049_v47, 1  ;;  %v3422_v30 = vld [vmem:[#allocation9 + $0x40] sm:$0xff]  }
  0xb2   : > { %v715_v12 = vor.u32 %v714_v8, %v711_v7  ;;  %v1065_v58 = vshll.u32 %v3416_v44, 16  ;;  %v1069_v60 = vshrl.u32 %v3416_v44, 16  ;;  %v1063_v63 = vor.u32 %v1061_v49, %v1059_v56  ;;  %3256 = vmatprep.subr.bf16.mxu1 %v3422_v30  ;;  %v4044_v44 = vld [vmem:[%s4303_s2] ss:$0 sm:$0xff] }
  0xb3   : > { %3085 = vmatmul.mubr.msk.bf16.gmra.mrb[4].mxu0 %vm448_vm1, %v671_v43  ;;  %v724_v19 = vor.u32 %v723_v15, %v720_v14  ;;  %v1053_v43 = vshrl.u32 %v3414_v38, 16  ;;  %v1097_v16 = vshll.u32 %v3420_v3, 16  ;;  %3264 = vmatpush3.bf16.msra.mxu1 %v3422_v30  ;;  %v4032_v38 = vld [vmem:[#allocation9] sm:$0xff]  }
  0xb4   : > { %3088 = vmatprep.mubr.msk.bf16.mxu0 %vm448_vm1, %v680_v54  ;;  %3109 = vmatpush3.bf16.msra.mxu0 %v3408_v41  ;;  %v716_v4 = vsel %vm627_vm2, %v706_v9, %v715_v12  ;;  %v1045_v41 = vshrl.u32 %v3413_v31, 16  ;;  %v1067_v51 = vrot.slane %v1065_v58, 1  ;;  %v3423_v31 = vld [vmem:[#allocation9 + $0x48] sm:$0xff]  }
  0xb5   : > { %3110 = vmatprep.subr.bf16.mxu0 %v3409_v57  ;;  %v725_v23 = vsel %vm627_vm2, %v715_v12, %v724_v19  ;;  %v734_v24 = vsel %vm627_vm2, %v724_v19, %v733_v20  ;;  %v1055_v55 = vor.u32 %v1053_v43, %v1051_v53  ;;  %v1099_v22 = vrot.slane %v1097_v16, 1  ;;  %3257 = vmatprep.subr.bf16.mxu1 %v3423_v31 }
  0xb6   : > { %v1047_v54 = vor.u32 %v1045_v41, %v1043_v45  ;;  %v1071_v2 = vor.u32 %v1069_v60, %v1067_v51  ;;  %v1068_v8 = vsel %vm1016_vm3, %v1063_v63, %v1067_v51 }
  0xb7   : > { %v1060_v50 = vsel %vm1016_vm3, %v1055_v55, %v1059_v56  ;;  %3265 = vmatpush3.bf16.msra.mxu1 %v3423_v31 }
  0xb8   : > { %3111 = vmatpush3.bf16.msra.mxu0 %v3409_v57  ;;  %v3417_v57 = vld [vmem:[#allocation2 + $0x3c] sm:$0xff]   ;;  %v1052_v59 = vsel %vm1016_vm3, %v1047_v54, %v1051_v53  ;;  %3258 = vmatprep.subr.bf16.mxu1 %v3424_v32 }
  0xb9   : > { %v1073_v61 = vshll.u32 %v3417_v57, 16  ;;  %v1077_v9 = vshrl.u32 %v3417_v57, 16  ;;  %3136 = vmatprep.subr.bf16.mxu0 %v3422_v30 }
  0xbb   : > { %3089 = vmatmul.mubr.msk.bf16.gmra.mrb[8].mxu0 %vm448_vm1, %v689_v62  ;;  %v3418_v62 = vld [vmem:[#allocation2 + $0x44] sm:$0xff]   ;;  %v1075_v5 = vrot.slane %v1073_v61, 1  ;;  %3266 = vmatpush3.bf16.msra.mxu1 %v3424_v32 }
  0xbc   : > { %3092 = vmatprep.mubr.msk.bf16.mxu0 %vm448_vm1, %v698_v6  ;;  %v3419_v6 = vld [vmem:[#allocation2 + $0x4c] sm:$0xff]   ;;  %v1081_v7 = vshll.u32 %v3418_v62, 16  ;;  %v1085_v11 = vshrl.u32 %v3418_v62, 16  ;;  %3259 = vmatprep.subr.bf16.mxu1 %v3425_v33 }
  0xbd   : > { %v1076_v10 = vsel %vm1016_vm3, %v1071_v2, %v1075_v5  ;;  %v1089_v12 = vshll.u32 %v3419_v6, 16  ;;  %v1093_v18 = vshrl.u32 %v3419_v6, 16 }
  0xbe   : > { %v1083_v1 = vrot.slane %v1081_v7, 1 }
  0xbf   : > { %v1091_v15 = vrot.slane %v1089_v12, 1  ;;  %3267 = vmatpush3.bf16.msra.mxu1 %v3425_v33 }
  0xc0   : > { %v1087_v14 = vor.u32 %v1085_v11, %v1083_v1 }
  0xc2   : > { %v1092_v19 = vsel %vm1016_vm3, %v1087_v14, %v1091_v15 }
  0xc3   : > { %3093 = vmatmul.mubr.msk.bf16.gmra.mrb[12].mxu0 %vm448_vm1, %v707_v13  ;;  %v1079_v13 = vor.u32 %v1077_v9, %v1075_v5 }
  0xc4   : > { %3096 = vmatprep.mubr.msk.bf16.mxu0 %vm448_vm1, %v716_v4  ;;  %v3421_v4 = vld [vmem:[#allocation2 + $0x5c] sm:$0x1f]  }
  0xc5   : > { %v1084_v17 = vsel %vm1016_vm3, %v1079_v13, %v1083_v1  ;;  %v1105_v21 = vshll.u32 %v3421_v4, 16  ;;  %v1109_v28 = vshrl.u32 %v3421_v4, 16 }
  0xc7   : > { %v1107_v25 = vrot.slane %v1105_v21, 1 }
  0xc9   : > { %v1111_v29 = vor.u32 %v1109_v28, %v1107_v25 }
  0xcb   : > { %3097 = vmatmul.mubr.msk.bf16.gmra.mrb[16].mxu0 %vm448_vm1, %v725_v23  ;;  %v1095_v23 = vor.u32 %v1093_v18, %v1091_v15 }
  0xcc   : > { %3100 = vmatprep.mubr.msk.bf16.mxu0 %vm448_vm1, %v734_v24 }
  0xcd   : > { %v1100_v26 = vsel %vm1016_vm3, %v1095_v23, %v1099_v22 }
  0xd3   : > { %3101 = vmatmul.mubr.msk.bf16.gmra.mrb[24].mxu0 %vm448_vm1, %v733_v20  ;;  %v1101_v20 = vshrl.u32 %v3420_v3, 16 }
  0xd4   : > { %3112 = vmatprep.mubr.msk.bf16.mxu0 %vm448_vm1, %v1028_v34  ;;  %v3426_v34 = vld [vmem:[#allocation9 + $0x60] sm:$0xff]  }
  0xd5   : > { %v1103_v24 = vor.u32 %v1101_v20, %v1099_v22  ;;  %3260 = vmatprep.subr.bf16.mxu1 %v3426_v34 }
  0xd6   : > { %3268 = vmatpush3.bf16.msra.mxu1 %v3426_v34 }
  0xd7   : > { %v1108_v27 = vsel %vm1016_vm3, %v1103_v24, %v1107_v25  ;;  %3261 = vmatprep.subr.bf16.mxu1 %v3427_v35 }
  0xda   : > { %3269 = vmatpush3.bf16.msra.mxu1 %v3427_v35 }
  0xdb   : > { %3113 = vmatmul.mubr.msk.bf16.vlgmr.msra.gmra.mrb[0].mxu0 %vm448_vm1, %v1036_v52  ;;  %3262 = vmatprep.subr.bf16.mxu1 %v3428_v36 }
  0xdc   : > { %3116 = vmatprep.mubr.msk.bf16.mxu0 %vm448_vm1, %v1044_v42  ;;  %3137 = vmatpush3.bf16.msra.mxu0 %v3422_v30 }
  0xdd   : > { %3138 = vmatprep.subr.bf16.mxu0 %v3423_v31 }
  0xde   : > { %3270 = vmatpush3.bf16.msra.mxu1 %v3428_v36 }
  0xdf   : > { %3263 = vmatprep.subr.bf16.mxu1 %v3433_v37 }
  0xe0   : > { %3139 = vmatpush3.bf16.msra.mxu0 %v3423_v31 }
  0xe1   : > { %3140 = vmatprep.subr.bf16.mxu0 %v3424_v32 }
  0xe2   : > { %3271 = vmatpush3.bf16.msra.mxu1 %v3433_v37 }
  0xe3   : > { %3117 = vmatmul.mubr.msk.bf16.gmra.mrb[4].mxu0 %vm448_vm1, %v1052_v59  ;;  %3176 = vmatprep.subr.bf16.mxu1 %v4032_v38 }
  0xe4   : > { %3120 = vmatprep.mubr.msk.bf16.mxu0 %vm448_vm1, %v1060_v50  ;;  %3141 = vmatpush3.bf16.msra.mxu0 %v3424_v32 }
  0xe5   : > { %3142 = vmatprep.subr.bf16.mxu0 %v3425_v33 }
  0xe8   : > { %3143 = vmatpush3.bf16.msra.mxu0 %v3425_v33 }
  0xe9   : > { %3144 = vmatprep.subr.bf16.mxu0 %v3426_v34 }
  0xeb   : > { %3121 = vmatmul.mubr.msk.bf16.gmra.mrb[8].mxu0 %vm448_vm1, %v1068_v8 }
  0xec   : > { %3124 = vmatprep.mubr.msk.bf16.mxu0 %vm448_vm1, %v1076_v10  ;;  %3145 = vmatpush3.bf16.msra.mxu0 %v3426_v34 }
  0xed   : > { %3146 = vmatprep.subr.bf16.mxu0 %v3427_v35 }
  0xf0   : > { %3147 = vmatpush3.bf16.msra.mxu0 %v3427_v35 }
  0xf1   : > { %3148 = vmatprep.subr.bf16.mxu0 %v3428_v36 }
  0xf3   : > { %3125 = vmatmul.mubr.msk.bf16.gmra.mrb[12].mxu0 %vm448_vm1, %v1084_v17 }
  0xf4   : > { %3128 = vmatprep.mubr.msk.bf16.mxu0 %vm448_vm1, %v1092_v19  ;;  %3149 = vmatpush3.bf16.msra.mxu0 %v3428_v36 }
  0xf5   : > { %3150 = vmatprep.subr.bf16.mxu0 %v3433_v37 }
  0xf8   : > { %3151 = vmatpush3.bf16.msra.mxu0 %v3433_v37 }
  0xfb   : > { %3129 = vmatmul.mubr.msk.bf16.gmra.mrb[16].mxu0 %vm448_vm1, %v1100_v26 }
  0xfc   : > { %3132 = vmatprep.mubr.msk.bf16.mxu0 %vm448_vm1, %v1108_v27 }
 0x103   : > { %3133 = vmatmul.mubr.msk.bf16.gmra.mrb[28].mxu0 %vm448_vm1, %v1111_v29 }
 0x176   : > { %v3070_v39 = vpop.f32.mrb[20].mxu0 }
 0x177   : > { %v599_v40 = vpop.f32.mrb[21].mxu0 }
 0x178   : > { %v3071_v45 = vpop.f32.mrb[22].mxu0 }
 0x179   : > { %v602_v46 = vpop.f32.mrb[23].mxu0  ;;  %v3441_v45 = vld [vmem:[#allocation9 + $0x8] sm:$0xff]  }
 0x1a6   : > { %v3102_v47 = vpop.f32.mrb[24].mxu0 }
 0x1a7   : > { %v4035_v52 = vadd.f32 %v3102_v47, %v3070_v39  ;;  %v909_v41 = vpop.f32.mrb[25].mxu0 }
 0x1a8   : > { %v4037_v42 = vadd.f32 %v909_v41, %v599_v40  ;;  %v3103_v43 = vpop.f32.mrb[26].mxu0 }
 0x1a9   : > { %v912_v48 = vpop.f32.mrb[27].mxu0 }
 0x1aa   : > { %v4039_v53 = vadd.f32 %v912_v48, %v602_v46 }
 0x1ae   : > { %v3114_v54 = vpop.f32.mrb[0].mxu0 }
 0x1af   : > { %v1206_v55 = vpop.f32.mrb[1].mxu0  ;;  %v1332_v59 = vadd.f32 %v3114_v54, %v4044_v44 }
 0x1b0   : > { %v1330_v56 = vadd.f32 %v4044_v44, %v1206_v55  ;;  %v3115_v57 = vpop.f32.mrb[2].mxu0 }
 0x1b1   : > { %v1209_v58 = vpop.f32.mrb[3].mxu0  ;;  %v1333_v62 = vadd.f32 %v3115_v57, %v4044_v44 }
 0x1b2   : > { %v2841_v49 = vpack.c.bf16 %v1330_v56, %v1330_v56  ;;  %v1331_v50 = vadd.f32 %v4044_v44, %v1209_v58  ;;  %v3446_v56 = vld [vmem:[#allocation9 + $0x10] sm:$0xff]  }
 0x1b4   : > { %1446 = vst [vmem:[#allocation3 + $0x4] sm:$0xf] %v2841_v49  ;;  %v2869_v60 = vpack.c.bf16 %v1332_v59, %v1331_v50 }
 0x1b6   : > { %2921 = vst [vmem:[#allocation3 + $0x8] sm:$0xff] %v2869_v60   ;;  %v3118_v61 = vpop.f32.mrb[4].mxu0  ;;  %v3449_v60 = vld [vmem:[#allocation9 + $0x18] sm:$0xff]  }
 0x1b7   : > { %1470 = vst [vmem:[#allocation3 + $0xc] sm:$0xf] %v3645_v0  ;;  %v1222_v51 = vpop.f32.mrb[5].mxu0  ;;  %v1336_v6 = vadd.f32 %v3118_v61, %v4044_v44 }
 0x1b8   : > { %v1334_v63 = vadd.f32 %v4044_v44, %v1222_v51  ;;  %v3119_v2 = vpop.f32.mrb[6].mxu0 }
 0x1b9   : > { %v1225_v5 = vpop.f32.mrb[7].mxu0  ;;  %v1337_v13 = vadd.f32 %v3119_v2, %v4044_v44 }
 0x1ba   : > { %v2874_v7 = vpack.c.bf16 %v1334_v63, %v1333_v62  ;;  %v1335_v8 = vadd.f32 %v4044_v44, %v1225_v5 }
 0x1bb   : > { %v4054_v10 = vld [vmem:[#allocation3 + $0x4] sm:$0xf] }
 0x1bc   : > { %2922 = vst [vmem:[#allocation3 + $0x10] sm:$0xff] %v2874_v7   ;;  %v2879_v9 = vpack.c.bf16 %v1336_v6, %v1335_v8 }
 0x1bd   : > { %v4056_v11 = vld [vmem:[#allocation3 + $0x8] sm:$0xf] }
 0x1be   : > { %2923 = vst [vmem:[#allocation3 + $0x18] sm:$0xff] %v2879_v9   ;;  %v3122_v12 = vpop.f32.mrb[8].mxu0  ;;  %v2758_v1 = vcombine.low %v4054_v10, %v4056_v11  ;;  %v4065_v19 = vld [vmem:[#allocation3 + $0xc] sm:$0xf] }
 0x1bf   : > { %1471 = vst [vmem:[#allocation3 + $0x18] sm:$0xf] %v3645_v0  ;;  %v1238_v3 = vpop.f32.mrb[9].mxu0  ;;  %v1340_v16 = vadd.f32 %v3122_v12, %v4044_v44 }
 0x1c0   : > { %v1338_v14 = vadd.f32 %v4044_v44, %v1238_v3  ;;  %v3123_v15 = vpop.f32.mrb[10].mxu0  ;;  %3152 = vmatprep.mubr.bf16.mxu0 %v2758_v1  ;;  %v3452_v1 = vld [vmem:[#allocation9 + $0x20] sm:$0xff]  }
 0x1c1   : > { %v1241_v4 = vpop.f32.mrb[11].mxu0  ;;  %v1341_v28 = vadd.f32 %v3123_v15, %v4044_v44 }
 0x1c2   : > { %v2884_v17 = vpack.c.bf16 %v1338_v14, %v1337_v13  ;;  %v1339_v18 = vadd.f32 %v4044_v44, %v1241_v4 }
 0x1c3   : > { %v4067_v20 = vld [vmem:[#allocation3 + $0x10] sm:$0xf]  ;;  %v4072_v24 = vld [vmem:[#allocation3 + $0x14] sm:$0xf] }
 0x1c4   : > { %2924 = vst [vmem:[#allocation3 + $0x20] sm:$0xff] %v2884_v17   ;;  %v2759_v21 = vcombine.low %v4065_v19, %v4067_v20  ;;  %v2889_v22 = vpack.c.bf16 %v1340_v16, %v1339_v18  ;;  %v3455_v18 = vld [vmem:[#allocation9 + $0x28] sm:$0xff]  }
 0x1c5   : > { %1472 = vst [vmem:[#allocation3 + $0x24] sm:$0xf] %v3645_v0  ;;  %v4082_v35 = vld [vmem:[#allocation3 + $0x1c] sm:$0xf] }
 0x1c6   : > { %2925 = vst [vmem:[#allocation3 + $0x28] sm:$0xff] %v2889_v22   ;;  %v3126_v23 = vpop.f32.mrb[12].mxu0  ;;  %3153 = vmatmul.mubr.bf16.vlgmr.msra.gmra.mrb[32].mxu0 %v2759_v21  ;;  %v4074_v25 = vld [vmem:[#allocation3 + $0x18] sm:$0xf] }
 0x1c7   : > { %v1254_v26 = vpop.f32.mrb[13].mxu0  ;;  %v2760_v27 = vcombine.low %v4072_v24, %v4074_v25  ;;  %v1344_v32 = vadd.f32 %v3126_v23, %v4044_v44  ;;  %v1478_v23 = vld [vmem:[#allocation3] sm:$0x8] }
 0x1c8   : > { %v1342_v29 = vadd.f32 %v4044_v44, %v1254_v26  ;;  %v3127_v30 = vpop.f32.mrb[14].mxu0 }
 0x1c9   : > { %v1257_v31 = vpop.f32.mrb[15].mxu0  ;;  %3156 = vmatprep.mubr.bf16.mxu1 %v2760_v27  ;;  %v1345_v48 = vadd.f32 %v3127_v30, %v4044_v44  ;;  %v3458_v27 = vld [vmem:[#allocation9 + $0x30] sm:$0xff]  }
 0x1ca   : > { %v2894_v33 = vpack.c.bf16 %v1342_v29, %v1341_v28  ;;  %v1343_v34 = vadd.f32 %v4044_v44, %v1257_v31  ;;  %v2778_v28 = vcombine.low %v1478_v23, %v4054_v10  ;;  %v3461_v31 = vld [vmem:[#allocation9 + $0x38] sm:$0xff]  }
 0x1cb   : > { %v4084_v36 = vld [vmem:[#allocation3 + $0x20] sm:$0xf] }
 0x1cc   : > { %2926 = vst [vmem:[#allocation3 + $0x30] sm:$0xff] %v2894_v33   ;;  %v2899_v37 = vpack.c.bf16 %v1344_v32, %v1343_v34  ;;  %v2761_v39 = vcombine.low %v4082_v35, %v4084_v36  ;;  %v4088_v40 = vld [vmem:[#allocation3 + $0x24] sm:$0xf]  ;;  %v1789_v33 = vshrl.u32 %v2778_v28, 16  ;;  %v1792_v34 = vshll.u32 %v2778_v28, 16 }
 0x1cd   : > { %1473 = vst [vmem:[#allocation3 + $0x30] sm:$0xf] %v3645_v0  ;;  %v4091_v46 = vld [vmem:[#allocation3 + $0x28] sm:$0xf]  ;;  %v4101_v50 = vld [vmem:[#allocation3 + $0x2c] sm:$0xf] }
 0x1ce   : > { %2927 = vst [vmem:[#allocation3 + $0x38] sm:$0xff] %v2899_v37   ;;  %v3130_v47 = vpop.f32.mrb[16].mxu0  ;;  %3157 = vmatmul.mubr.bf16.vlgmr.msra.gmra.mrb[0].mxu1 %v2761_v39  ;;  %v2762_v41 = vcombine.low %v4088_v40, %v4091_v46  ;;  %v2780_v37 = vcombine.low %v4067_v20, %v4072_v24  ;;  %v2781_v39 = vcombine.low %v4074_v25, %v4082_v35 }
 0x1cf   : > { %1474 = vst [vmem:[#allocation3 + $0x3c] sm:$0xf] %v3645_v0  ;;  %v1270_v43 = vpop.f32.mrb[17].mxu0  ;;  %3177 = vmatpush3.bf16.msra.mxu1 %v4032_v38  ;;  %v1348_v58 = vadd.f32 %v3130_v47, %v4044_v44 }
 0x1d0   : > { %v1346_v54 = vadd.f32 %v4044_v44, %v1270_v43  ;;  %v3131_v55 = vpop.f32.mrb[18].mxu0  ;;  %3160 = vmatprep.mubr.bf16.mxu1 %v2762_v41  ;;  %3178 = vmatprep.subr.bf16.mxu1 %v3441_v45  ;;  %v1791_v43 = vrot.slane %v1789_v33, 3  ;;  %v1815_v24 = vshrl.u32 %v2781_v39, 16  ;;  %v3466_v33 = vld [vmem:[#allocation9 + $0xa0] sm:$0xff]  }
 0x1d1   : > { %v1273_v57 = vpop.f32.mrb[19].mxu0  ;;  %v1349_v3 = vadd.f32 %v3131_v55, %v4044_v44  ;;  %v1806_v55 = vshrl.u32 %v2780_v37, 16 }
 0x1d2   : > { %v2904_v59 = vpack.c.bf16 %v1346_v54, %v1345_v48  ;;  %v1347_v49 = vadd.f32 %v4044_v44, %v1273_v57  ;;  %v1794_v48 = vrot.slane %v1792_v34, 4  ;;  %v3462_v54 = vld [vmem:[#allocation9 + $0x80] sm:$0xff]   ;;  %v1818_v57 = vshll.u32 %v2781_v39, 16 }
 0x1d3   : > { %3179 = vmatpush3.bf16.msra.mxu1 %v3441_v45  ;;  %v4105_v51 = vld [vmem:[#allocation3 + $0x34] sm:$0xf] }
 0x1d4   : > { %2928 = vst [vmem:[#allocation3 + $0x40] sm:$0xff] %v2904_v59   ;;  %v2909_v38 = vpack.c.bf16 %v1348_v58, %v1347_v49  ;;  %v4103_v61 = vld [vmem:[#allocation3 + $0x30] sm:$0xf]  ;;  %3180 = vmatprep.subr.bf16.mxu1 %v3446_v56  ;;  %v1795_v35 = vor.u32 %v1794_v48, %v1791_v43  ;;  %v1808_v59 = vrot.slane %v1806_v55, 3 }
 0x1d5   : > { %v2763_v62 = vcombine.low %v4101_v50, %v4103_v61  ;;  %v4109_v63 = vld [vmem:[#allocation3 + $0x38] sm:$0xf] }
 0x1d6   : > { %2929 = vst [vmem:[#allocation3 + $0x48] sm:$0xff] %v2909_v38   ;;  %v3134_v2 = vpop.f32.mrb[28].mxu0  ;;  %v2764_v5 = vcombine.low %v4105_v51, %v4109_v63  ;;  %v4119_v15 = vld [vmem:[#allocation3 + $0x3c] sm:$0xf]  ;;  %v1817_v38 = vrot.slane %v1815_v24, 3 }
 0x1d7   : > { %1475 = vst [vmem:[#allocation3 + $0x48] sm:$0xf] %v3645_v0  ;;  %v1322_v6 = vadd.f32 %v3134_v2, %v4035_v52  ;;  %v1286_v7 = vpop.f32.mrb[29].mxu0  ;;  %3161 = vmatmul.mubr.bf16.gmra.mrb[4].mxu1 %v2763_v62  ;;  %v1820_v62 = vrot.slane %v1818_v57, 4  ;;  %v2783_v2 = vcombine.low %v4091_v46, %v4101_v50  ;;  %v2785_v46 = vcombine.low %v4109_v63, %v4119_v15 }
 0x1d8   : > { %v1320_v8 = vadd.f32 %v1286_v7, %v4037_v42  ;;  %v3135_v9 = vpop.f32.mrb[30].mxu0  ;;  %3164 = vmatprep.mubr.bf16.mxu1 %v2764_v5  ;;  %3181 = vmatpush3.bf16.msra.mxu1 %v3446_v56  ;;  %v1809_v56 = vshll.u32 %v2780_v37, 16 }
 0x1d9   : > { %v1289_v12 = vpop.f32.mrb[31].mxu0  ;;  %3182 = vmatprep.subr.bf16.mxu1 %v3449_v60  ;;  %v1352_v52 = vadd.f32 %v4044_v44, %v1322_v6  ;;  %v1833_v9 = vshrl.u32 %v2783_v2, 16 }
 0x1da   : > { %v1350_v13 = vadd.f32 %v4044_v44, %v1320_v8  ;;  %v1321_v14 = vadd.f32 %v1289_v12, %v4039_v53  ;;  %v1811_v49 = vrot.slane %v1809_v56, 4  ;;  %v1836_v12 = vshll.u32 %v2783_v2, 16  ;;  %v3468_v56 = vld [vmem:[#allocation9 + $0xb0] sm:$0xff]  }
 0x1db   : > { %v4121_v4 = vld [vmem:[#allocation3 + $0x40] sm:$0xf]  ;;  %v4127_v22 = vld [vmem:[#allocation3 + $0x44] sm:$0xf] }
 0x1dc   : > { %v2914_v16 = vpack.c.bf16 %v1350_v13, %v1349_v3  ;;  %v1351_v42 = vadd.f32 %v4044_v44, %v1321_v14  ;;  %v2765_v17 = vcombine.low %v4119_v15, %v4121_v4  ;;  %3183 = vmatpush3.bf16.msra.mxu1 %v3449_v60  ;;  %v2779_v44 = vcombine.low %v4056_v11, %v4065_v19  ;;  %v3463_v3 = vld [vmem:[#allocation9 + $0x88] sm:$0xff]  }
 0x1dd   : > { %3184 = vmatprep.subr.bf16.mxu1 %v3452_v1  ;;  %v4137_v32 = vld [vmem:[#allocation3 + $0x4c] sm:$0xf]  ;;  %v2782_v60 = vcombine.low %v4084_v36, %v4088_v40  ;;  %v1812_v6 = vor.u32 %v1811_v49, %v1808_v59  ;;  %v2784_v13 = vcombine.low %v4103_v61, %v4105_v51  ;;  %v1851_v61 = vshrl.u32 %v2785_v46, 16 }
 0x1de   : > { %2930 = vst [vmem:[#allocation3 + $0x50] sm:$0xff] %v2914_v16   ;;  %v2919_v21 = vpack.c.bf16 %v1352_v52, %v1351_v42  ;;  %v4129_v53 = vld [vmem:[#allocation3 + $0x48] sm:$0xf]  ;;  %v1797_v29 = vshrl.u32 %v2779_v44, 16  ;;  %v1800_v30 = vshll.u32 %v2779_v44, 16  ;;  %v1835_v52 = vrot.slane %v1833_v9, 3 }
 0x1df   : > { %1476 = vst [vmem:[#allocation3 + $0x54] sm:$0xf] %v3645_v0  ;;  %3165 = vmatmul.mubr.bf16.gmra.mrb[8].mxu1 %v2765_v17  ;;  %v2766_v26 = vcombine.low %v4127_v22, %v4129_v53  ;;  %v1824_v7 = vshrl.u32 %v2782_v60, 16  ;;  %v1827_v8 = vshll.u32 %v2782_v60, 16  ;;  %v1838_v16 = vrot.slane %v1836_v12, 4  ;;  %v3464_v42 = vld [vmem:[#allocation9 + $0x90] sm:$0xff]  }
 0x1e0   : > { %2931 = vst [vmem:[#allocation3 + $0x58] sm:$0xff] %v2919_v21   ;;  %3185 = vmatpush3.bf16.msra.mxu1 %v3452_v1  ;;  %v1799_v47 = vrot.slane %v1797_v29, 3  ;;  %v1802_v41 = vrot.slane %v1800_v30, 4  ;;  %v1821_v1 = vor.u32 %v1820_v62, %v1817_v38  ;;  %v1842_v17 = vshrl.u32 %v2784_v13, 16  ;;  %v3469_v62 = vld [vmem:[#allocation3 + $0x4] sm:$0xff]  }
 0x1e1   : > { %3168 = vmatprep.mubr.bf16.mxu1 %v2766_v26  ;;  %3186 = vmatprep.subr.bf16.mxu1 %v3455_v18  ;;  %v1826_v40 = vrot.slane %v1824_v7, 3  ;;  %v1829_v14 = vrot.slane %v1827_v8, 4  ;;  %v1854_v51 = vshll.u32 %v2785_v46, 16  ;;  %v1839_v23 = vor.u32 %v1838_v16, %v1835_v52  ;;  %v3465_v26 = vld [vmem:[#allocation9 + $0x98] sm:$0xff]  }
 0x1e2   : > { %v1803_v58 = vor.u32 %v1802_v41, %v1799_v47  ;;  %v1822_v50 = vsel %vm627_vm2, %v1812_v6, %v1821_v1  ;;  %v2786_v63 = vcombine.low %v4121_v4, %v4127_v22  ;;  %v1844_v44 = vrot.slane %v1842_v17, 3  ;;  %v3474_v17 = vld [vmem:[#allocation3 + $0x24] sm:$0xff]  }
 0x1e3   : > { %v1830_v21 = vor.u32 %v1829_v14, %v1826_v40  ;;  %v2787_v28 = vcombine.low %v4129_v53, %v4137_v32  ;;  %v1853_v30 = vrot.slane %v1851_v61, 3  ;;  %v2180_v7 = vshll.u32 %v3469_v62, 16  ;;  %v3473_v40 = vld [vmem:[#allocation3 + $0x1c] sm:$0xff]  }
 0x1e4   : > { %3187 = vmatpush3.bf16.msra.mxu1 %v3455_v18  ;;  %v1804_v5 = vsel %vm627_vm2, %v1795_v35, %v1803_v58  ;;  %v1813_v36 = vsel %vm627_vm2, %v1803_v58, %v1812_v6  ;;  %v1845_v18 = vshll.u32 %v2784_v13, 16  ;;  %v1860_v34 = vshrl.u32 %v2786_v63, 16  ;;  %v3471_v35 = vld [vmem:[#allocation9 + $0xb8] sm:$0xff]   ;;  %v3470_v6 = vld [vmem:[#allocation3 + $0xc] sm:$0xff]  }
 0x1e5   : > { %v4139_v0 = vld [vmem:[#allocation3 + $0x50] sm:$0xf]  ;;  %3188 = vmatprep.subr.bf16.mxu1 %v3458_v27  ;;  %v1831_v15 = vsel %vm627_vm2, %v1821_v1, %v1830_v21  ;;  %v1840_v29 = vsel %vm627_vm2, %v1830_v21, %v1839_v23  ;;  %v1869_v4 = vshrl.u32 %v2787_v28, 16  ;;  %v1872_v22 = vshll.u32 %v2787_v28, 16 }
 0x1e6   : > { %v2767_v11 = vcombine.low %v4137_v32, %v4139_v0  ;;  %v4143_v19 = vld [vmem:[#allocation3 + $0x54] sm:$0xf]  ;;  %v1862_v47 = vrot.slane %v1860_v34, 3  ;;  %v2185_v12 = vshll.u32 %v3470_v6, 16  ;;  %v2182_v1 = vrot.slane %v2180_v7, 1  ;;  %v3477_v34 = vld [vmem:[#allocation3 + $0x3c] sm:$0xff]  }
 0x1e7   : > { %v4147_v10 = vld [vmem:[#allocation3 + $0x58] sm:$0xf]  ;;  %v4153_v20 = vld [vmem:[#allocation3 + $0x5c] sm:$0xf]  ;;  %v2788_v53 = vcombine.low %v4139_v0, %v4143_v19  ;;  %v1874_v55 = vrot.slane %v1872_v22, 4  ;;  %v2178_v13 = vshrl.u32 %v3469_v62, 16 }
 0x1e8   : > { %3169 = vmatmul.mubr.bf16.gmra.mrb[12].mxu1 %v2767_v11  ;;  %v2768_v45 = vcombine.low %v4143_v19, %v4147_v10  ;;  %v2769_v25 = vcombine.low %v4153_v20, %v4153_v20  ;;  %v1863_v11 = vshll.u32 %v2786_v63, 16  ;;  %v2789_v43 = vcombine.low %v4147_v10, %v4153_v20 }
 0x1e9   : > { %3189 = vmatpush3.bf16.msra.mxu1 %v3458_v27  ;;  %v1847_v27 = vrot.slane %v1845_v18, 4  ;;  %v1878_v24 = vshrl.u32 %v2788_v53, 16  ;;  %v1881_v57 = vshll.u32 %v2788_v53, 16  ;;  %v2183_v14 = vor.u32 %v2182_v1, %v2178_v13 }
 0x1ea   : > { %3172 = vmatprep.mubr.bf16.mxu1 %v2768_v45  ;;  %3190 = vmatprep.subr.bf16.mxu1 %v3461_v31  ;;  %v3467_v45 = vld [vmem:[#allocation9 + $0xa8] sm:$0xff]   ;;  %v1865_v41 = vrot.slane %v1863_v11, 4  ;;  %v1887_v0 = vshrl.u32 %v2789_v43, 16  ;;  %v1890_v19 = vshll.u32 %v2789_v43, 16  ;;  %v2201_v52 = vshll.u32 %v3473_v40, 16 }
 0x1eb   : > { %v1848_v37 = vor.u32 %v1847_v27, %v1844_v44  ;;  %v1880_v20 = vrot.slane %v1878_v24, 3  ;;  %v1883_v59 = vrot.slane %v1881_v57, 4  ;;  %v2189_v16 = vshrl.u32 %v3470_v6, 16 }
 0x1ec   : > { %v1866_v58 = vor.u32 %v1865_v41, %v1862_v47  ;;  %v1889_v60 = vrot.slane %v1887_v0, 3  ;;  %v1892_v38 = vrot.slane %v1890_v19, 4  ;;  %v2203_v61 = vrot.slane %v2201_v52, 1 }
 0x1ed   : > { %3191 = vmatpush3.bf16.msra.mxu1 %v3461_v31  ;;  %v1856_v31 = vrot.slane %v1854_v51, 4  ;;  %v1849_v32 = vsel %vm627_vm2, %v1839_v23, %v1848_v37  ;;  %v1884_v2 = vor.u32 %v1883_v59, %v1880_v20  ;;  %v3475_v51 = vld [vmem:[#allocation3 + $0x2c] sm:$0xff]   ;;  %v2205_v27 = vshrl.u32 %v3473_v40, 16 }
 0x1ee   : > { %3216 = vmatprep.subr.bf16.mxu1 %v3462_v54  ;;  %v2217_v44 = vshll.u32 %v3475_v51, 16  ;;  %v2237_v0 = vshrl.u32 %v3477_v34, 16 }
 0x1ef   : > { %v1857_v39 = vor.u32 %v1856_v31, %v1853_v30  ;;  %v2207_v30 = vor.u32 %v2205_v27, %v2203_v61  ;;  %v2213_v31 = vshrl.u32 %v3474_v17, 16 }
 0x1f0   : > { %3173 = vmatmul.mubr.bf16.gmra.mrb[16].mxu1 %v2769_v25 }
 0x1f1   : > { %3192 = vmatprep.mubr.bf16.mxu1 %v1804_v5  ;;  %v1858_v48 = vsel %vm627_vm2, %v1848_v37, %v1857_v39  ;;  %v1867_v10 = vsel %vm627_vm2, %v1857_v39, %v1866_v58  ;;  %v1893_v5 = vor.u32 %v1892_v38, %v1889_v60  ;;  %v2233_v39 = vshll.u32 %v3477_v34, 16 }
 0x1f3   : > { %v1894_v9 = vsel %vm627_vm2, %v1884_v2, %v1893_v5  ;;  %v2235_v43 = vrot.slane %v2233_v39, 1 }
 0x1f8   : > { %3193 = vmatmul.mubr.bf16.vlgmr.msra.gmra.mrb[20].mxu1 %v1813_v36  ;;  %v2187_v36 = vrot.slane %v2185_v12, 1 }
 0x1f9   : > { %3196 = vmatprep.mubr.bf16.mxu1 %v1822_v50  ;;  %3217 = vmatpush3.bf16.msra.mxu1 %v3462_v54  ;;  %v1871_v54 = vrot.slane %v1869_v4, 3 }
 0x1fa   : > { %3218 = vmatprep.subr.bf16.mxu1 %v3463_v3  ;;  %v2188_v50 = vsel %vm1016_vm3, %v2183_v14, %v2187_v36  ;;  %v2191_v18 = vor.u32 %v2189_v16, %v2187_v36 }
 0x1fb   : > { %v1875_v25 = vor.u32 %v1874_v55, %v1871_v54 }
 0x1fd   : > { %3219 = vmatpush3.bf16.msra.mxu1 %v3463_v3  ;;  %v1876_v49 = vsel %vm627_vm2, %v1866_v58, %v1875_v25  ;;  %v1885_v8 = vsel %vm627_vm2, %v1875_v25, %v1884_v2  ;;  %v3472_v3 = vld [vmem:[#allocation3 + $0x14] sm:$0xff]   ;;  %v2239_v25 = vor.u32 %v2237_v0, %v2235_v43 }
 0x1fe   : > { %3220 = vmatprep.subr.bf16.mxu1 %v3464_v42  ;;  %v2193_v46 = vshll.u32 %v3472_v3, 16  ;;  %v2197_v21 = vshrl.u32 %v3472_v3, 16  ;;  %v3480_v58 = vld [vmem:[#allocation3 + $0x54] sm:$0xff]  }
 0x1ff   : > { %v2257_v20 = vshll.u32 %v3480_v58, 16 }
 0x200   : > { %3197 = vmatmul.mubr.bf16.gmra.mrb[24].mxu1 %v1831_v15 }
 0x201   : > { %3200 = vmatprep.mubr.bf16.mxu1 %v1840_v29  ;;  %3221 = vmatpush3.bf16.msra.mxu1 %v3464_v42  ;;  %v2195_v42 = vrot.slane %v2193_v46, 1  ;;  %v3476_v29 = vld [vmem:[#allocation3 + $0x34] sm:$0xff]   ;;  %v2259_v62 = vrot.slane %v2257_v20, 1 }
 0x202   : > { %3222 = vmatprep.subr.bf16.mxu1 %v3465_v26  ;;  %v2225_v37 = vshll.u32 %v3476_v29, 16  ;;  %v2229_v41 = vshrl.u32 %v3476_v29, 16 }
 0x203   : > { %v2199_v23 = vor.u32 %v2197_v21, %v2195_v42  ;;  %v2196_v63 = vsel %vm1016_vm3, %v2191_v18, %v2195_v42 }
 0x204   : > { %v2227_v53 = vrot.slane %v2225_v37, 1 }
 0x205   : > { %3223 = vmatpush3.bf16.msra.mxu1 %v3465_v26  ;;  %v2209_v26 = vshll.u32 %v3474_v17, 16  ;;  %v2204_v15 = vsel %vm1016_vm3, %v2199_v23, %v2203_v61 }
 0x206   : > { %3224 = vmatprep.subr.bf16.mxu1 %v3466_v33  ;;  %v2231_v54 = vor.u32 %v2229_v41, %v2227_v53 }
 0x207   : > { %v2211_v28 = vrot.slane %v2209_v26, 1 }
 0x208   : > { %3201 = vmatmul.mubr.bf16.gmra.mrb[28].mxu1 %v1849_v32  ;;  %v3478_v32 = vld [vmem:[#allocation3 + $0x44] sm:$0xff]   ;;  %v2236_v24 = vsel %vm1016_vm3, %v2231_v54, %v2235_v43 }
 0x209   : > { %3204 = vmatprep.mubr.bf16.mxu1 %v1858_v48  ;;  %3225 = vmatpush3.bf16.msra.mxu1 %v3466_v33  ;;  %v2219_v33 = vrot.slane %v2217_v44, 1  ;;  %v2215_v11 = vor.u32 %v2213_v31, %v2211_v28  ;;  %v2212_v4 = vsel %vm1016_vm3, %v2207_v30, %v2211_v28  ;;  %v3479_v48 = vld [vmem:[#allocation3 + $0x4c] sm:$0xff]   ;;  %v2241_v55 = vshll.u32 %v3478_v32, 16 }
 0x20a   : > { %3226 = vmatprep.subr.bf16.mxu1 %v3467_v45  ;;  %v2249_v57 = vshll.u32 %v3479_v48, 16  ;;  %v2253_v2 = vshrl.u32 %v3479_v48, 16 }
 0x20b   : > { %v2220_v22 = vsel %vm1016_vm3, %v2215_v11, %v2219_v33  ;;  %v2243_v19 = vrot.slane %v2241_v55, 1 }
 0x20d   : > { %3227 = vmatpush3.bf16.msra.mxu1 %v3467_v45  ;;  %v2221_v45 = vshrl.u32 %v3475_v51, 16  ;;  %v2244_v60 = vsel %vm1016_vm3, %v2239_v25, %v2243_v19 }
 0x20e   : > { %3228 = vmatprep.subr.bf16.mxu1 %v3468_v56 }
 0x20f   : > { %v2223_v47 = vor.u32 %v2221_v45, %v2219_v33 }
 0x210   : > { %3205 = vmatmul.mubr.bf16.gmra.mrb[32].mxu1 %v1867_v10  ;;  %v2251_v10 = vrot.slane %v2249_v57, 1 }
 0x211   : > { %3208 = vmatprep.mubr.bf16.mxu1 %v1876_v49  ;;  %3229 = vmatpush3.bf16.msra.mxu1 %v3468_v56  ;;  %v2228_v56 = vsel %vm1016_vm3, %v2223_v47, %v2227_v53  ;;  %v3481_v49 = vld [vmem:[#allocation3 + $0x5c] sm:$0x1f]  }
 0x212   : > { %3230 = vmatprep.subr.bf16.mxu1 %v3471_v35  ;;  %v2265_v6 = vshll.u32 %v3481_v49, 16  ;;  %v2255_v7 = vor.u32 %v2253_v2, %v2251_v10  ;;  %v2269_v3 = vshrl.u32 %v3481_v49, 16 }
 0x214   : > { %v2260_v12 = vsel %vm1016_vm3, %v2255_v7, %v2259_v62 }
 0x215   : > { %3231 = vmatpush3.bf16.msra.mxu1 %v3471_v35  ;;  %v2245_v35 = vshrl.u32 %v3478_v32, 16 }
 0x217   : > { %v2247_v59 = vor.u32 %v2245_v35, %v2243_v19 }
 0x218   : > { %3209 = vmatmul.mubr.bf16.gmra.mrb[36].mxu1 %v1885_v8 }
 0x219   : > { %3212 = vmatprep.mubr.bf16.mxu1 %v1894_v9  ;;  %v2252_v38 = vsel %vm1016_vm3, %v2247_v59, %v2251_v10  ;;  %v2267_v9 = vrot.slane %v2265_v6, 1 }
 0x21b   : > { %v2271_v13 = vor.u32 %v2269_v3, %v2267_v9 }
 0x220   : > { %3213 = vmatmul.mubr.bf16.gmra.mrb[40].mxu1 %v1893_v5  ;;  %v2261_v5 = vshrl.u32 %v3480_v58, 16 }
 0x221   : > { %3232 = vmatprep.mubr.bf16.mxu1 %v2188_v50 }
 0x222   : > { %v2263_v8 = vor.u32 %v2261_v5, %v2259_v62 }
 0x224   : > { %v2268_v1 = vsel %vm1016_vm3, %v2263_v8, %v2267_v9 }
 0x228   : > { %3233 = vmatmul.mubr.bf16.vlgmr.msra.gmra.mrb[44].mxu1 %v2196_v63 }
 0x229   : > { %3236 = vmatprep.mubr.bf16.mxu1 %v2204_v15 }
 0x230   : > { %3237 = vmatmul.mubr.bf16.gmra.mrb[48].mxu1 %v2212_v4 }
 0x231   : > { %3240 = vmatprep.mubr.bf16.mxu1 %v2220_v22 }
 0x238   : > { %3241 = vmatmul.mubr.bf16.gmra.mrb[52].mxu1 %v2228_v56 }
 0x239   : > { %3244 = vmatprep.mubr.bf16.mxu1 %v2236_v24 }
 0x240   : > { %3245 = vmatmul.mubr.bf16.gmra.mrb[56].mxu1 %v2244_v60 }
 0x241   : > { %3248 = vmatprep.mubr.bf16.mxu1 %v2252_v38 }
 0x248   : > { %3249 = vmatmul.mubr.bf16.gmra.mrb[60].mxu1 %v2260_v12 }
 0x249   : > { %3252 = vmatprep.mubr.bf16.mxu1 %v2268_v1 }
 0x250   : > { %3253 = vmatmul.mubr.bf16.gmra.mrb[64].mxu1 %v2271_v13 }
 0x299   : > { %v3154_v36 = vpop.f32.mrb[32].mxu0 }
 0x29a   : > { %v1687_v40 = vpop.f32.mrb[33].mxu0 }
 0x29b   : > { %v3155_v14 = vpop.f32.mrb[34].mxu0 }
 0x29c   : > { %v1690_v46 = vpop.f32.mrb[35].mxu0 }
 0x2a1   : > { %v3158_v50 = vpop.f32.mrb[0].mxu1 }
 0x2a2   : > { %v1702_v52 = vpop.f32.mrb[1].mxu1 }
 0x2a3   : > { %v3159_v16 = vpop.f32.mrb[2].mxu1 }
 0x2a4   : > { %v1705_v42 = vpop.f32.mrb[3].mxu1 }
 0x2aa   : > { %v3162_v17 = vpop.f32.mrb[4].mxu1 }
 0x2ab   : > { %v1717_v18 = vpop.f32.mrb[5].mxu1 }
 0x2ac   : > { %v3163_v21 = vpop.f32.mrb[6].mxu1 }
 0x2ad   : > { %v1719_v61 = vpop.f32.mrb[7].mxu1 }
 0x2b2   : > { %v3166_v51 = vpop.f32.mrb[8].mxu1 }
 0x2b3   : > { %v1731_v23 = vpop.f32.mrb[9].mxu1 }
 0x2b4   : > { %v3167_v26 = vpop.f32.mrb[10].mxu1 }
 0x2b5   : > { %v1734_v63 = vpop.f32.mrb[11].mxu1 }
 0x2bb   : > { %v3170_v15 = vpop.f32.mrb[12].mxu1 }
 0x2bc   : > { %v1746_v44 = vpop.f32.mrb[13].mxu1 }
 0x2bd   : > { %v3171_v27 = vpop.f32.mrb[14].mxu1 }
 0x2be   : > { %v1749_v28 = vpop.f32.mrb[15].mxu1 }
 0x2c3   : > { %v3174_v29 = vpop.f32.mrb[16].mxu1 }
 0x2c4   : > { %v1761_v30 = vpop.f32.mrb[17].mxu1 }
 0x2c5   : > { %v3175_v31 = vpop.f32.mrb[18].mxu1 }
 0x2c6   : > { %v1763_v33 = vpop.f32.mrb[19].mxu1 }
 0x2cb   : > { %v3194_v34 = vpop.f32.mrb[20].mxu1 }
 0x2cc   : > { %v1989_v11 = vpop.f32.mrb[21].mxu1 }
 0x2cd   : > { %v1990_v37 = vadd.f32 %v1989_v11, %v1687_v40  ;;  %v3195_v4 = vpop.f32.mrb[22].mxu1 }
 0x2ce   : > { %v2000_v22 = vadd.f32 %v3195_v4, %v3155_v14  ;;  %v1992_v39 = vpop.f32.mrb[23].mxu1  ;;  %v4209_v14 = vld [vmem:[%s4305_s4] ss:$0 sm:$0xff] }
 0x2cf   : > { %v1993_v45 = vadd.f32 %v1992_v39, %v1690_v46 }
 0x2d3   : > { %v3198_v53 = vpop.f32.mrb[24].mxu1 }
 0x2d4   : > { %v2012_v32 = vadd.f32 %v3198_v53, %v3158_v50  ;;  %v2004_v47 = vpop.f32.mrb[25].mxu1 }
 0x2d5   : > { %v2005_v41 = vadd.f32 %v2004_v47, %v1702_v52  ;;  %v3199_v43 = vpop.f32.mrb[26].mxu1 }
 0x2d6   : > { %v2015_v48 = vadd.f32 %v3199_v43, %v3159_v16  ;;  %v2007_v54 = vpop.f32.mrb[27].mxu1 }
 0x2db   : > { %v3202_v55 = vpop.f32.mrb[28].mxu1 }
 0x2dc   : > { %v2027_v56 = vadd.f32 %v3202_v55, %v3162_v17  ;;  %v2019_v24 = vpop.f32.mrb[29].mxu1 }
 0x2dd   : > { %v3203_v57 = vpop.f32.mrb[30].mxu1 }
 0x2de   : > { %v2021_v58 = vpop.f32.mrb[31].mxu1 }
 0x2df   : > { %v2022_v0 = vadd.f32 %v2021_v58, %v1719_v61 }
 0x2e3   : > { %v3206_v19 = vpop.f32.mrb[32].mxu1 }
 0x2e4   : > { %v2033_v25 = vpop.f32.mrb[33].mxu1 }
 0x2e5   : > { %v2034_v35 = vadd.f32 %v2033_v25, %v1731_v23  ;;  %v3207_v10 = vpop.f32.mrb[34].mxu1 }
 0x2e6   : > { %v2044_v20 = vadd.f32 %v3207_v10, %v3167_v26  ;;  %v2036_v59 = vpop.f32.mrb[35].mxu1 }
 0x2e7   : > { %v2037_v49 = vadd.f32 %v2036_v59, %v1734_v63 }
 0x2eb   : > { %v3210_v60 = vpop.f32.mrb[36].mxu1 }
 0x2ec   : > { %v4195_v38 = vadd.f32 %v3210_v60, %v3170_v15  ;;  %v2048_v62 = vpop.f32.mrb[37].mxu1 }
 0x2ed   : > { %v4197_v2 = vadd.f32 %v2048_v62, %v1746_v44  ;;  %v3211_v5 = vpop.f32.mrb[38].mxu1 }
 0x2ee   : > { %v4199_v6 = vadd.f32 %v3211_v5, %v3171_v27  ;;  %v2051_v7 = vpop.f32.mrb[39].mxu1 }
 0x2f3   : > { %v3214_v8 = vpop.f32.mrb[40].mxu1 }
 0x2f4   : > { %v4201_v9 = vadd.f32 %v3214_v8, %v3174_v29  ;;  %v2063_v12 = vpop.f32.mrb[41].mxu1 }
 0x2f5   : > { %v3215_v1 = vpop.f32.mrb[42].mxu1 }
 0x2f6   : > { %v2065_v3 = vpop.f32.mrb[43].mxu1 }
 0x2f7   : > { %v4203_v13 = vadd.f32 %v2065_v3, %v1763_v33 }
 0x2fb   : > { %v3234_v36 = vpop.f32.mrb[44].mxu1 }
 0x2fc   : > { %v2366_v40 = vpop.f32.mrb[45].mxu1 }
 0x2fd   : > { %v2453_v46 = vadd.f32 %v2366_v40, %v1990_v37  ;;  %v3235_v50 = vpop.f32.mrb[46].mxu1 }
 0x2fe   : > { %v2455_v52 = vadd.f32 %v3235_v50, %v2000_v22  ;;  %v2369_v16 = vpop.f32.mrb[47].mxu1 }
 0x2ff   : > { %v2476_v42 = vadd.f32 %v4209_v14, %v2453_v46  ;;  %v2454_v17 = vadd.f32 %v2369_v16, %v1993_v45 }
 0x300   : > { %v2478_v18 = vadd.f32 %v4209_v14, %v2455_v52 }
 0x301   : > { %2492 = vst [vmem:[%s4213_s28] sm:$0xff] %v2476_v42  ;;  %v2477_v21 = vadd.f32 %v4209_v14, %v2454_v17 }
 0x302   : > { %2819 = vst [vmem:[%s4213_s28 + $0x10] sm:$0xff] %v2478_v18 }
 0x303   : > { %2493 = vst [vmem:[%s4213_s28 + $0x8] sm:$0xff] %v2477_v21  ;;  %v3238_v61 = vpop.f32.mrb[48].mxu1 }
 0x304   : > { %v2457_v51 = vadd.f32 %v3238_v61, %v2012_v32  ;;  %v2381_v23 = vpop.f32.mrb[49].mxu1 }
 0x305   : > { %v2456_v26 = vadd.f32 %v2381_v23, %v2005_v41  ;;  %v3239_v63 = vpop.f32.mrb[50].mxu1 }
 0x306   : > { %v2480_v15 = vadd.f32 %v4209_v14, %v2457_v51  ;;  %v2458_v44 = vadd.f32 %v3239_v63, %v2015_v48  ;;  %v2384_v27 = vpop.f32.mrb[51].mxu1 }
 0x307   : > { %v2479_v28 = vadd.f32 %v4209_v14, %v2456_v26 }
 0x308   : > { %2821 = vst [vmem:[%s4213_s28 + $0x20] sm:$0xff] %v2480_v15  ;;  %v2481_v29 = vadd.f32 %v4209_v14, %v2458_v44 }
 0x309   : > { %2820 = vst [vmem:[%s4213_s28 + $0x18] sm:$0xff] %v2479_v28 }
 0x30a   : > { %2822 = vst [vmem:[%s4213_s28 + $0x28] sm:$0xff] %v2481_v29 }
 0x30b   : > { %v3242_v30 = vpop.f32.mrb[52].mxu1 }
 0x30c   : > { %v2460_v31 = vadd.f32 %v3242_v30, %v2027_v56  ;;  %v2396_v33 = vpop.f32.mrb[53].mxu1 }
 0x30d   : > { %v3243_v34 = vpop.f32.mrb[54].mxu1 }
 0x30e   : > { %v2483_v11 = vadd.f32 %v4209_v14, %v2460_v31  ;;  %v2398_v37 = vpop.f32.mrb[55].mxu1 }
 0x30f   : > { %v2459_v4 = vadd.f32 %v2398_v37, %v2022_v0 }
 0x310   : > { %2824 = vst [vmem:[%s4213_s28 + $0x38] sm:$0xff] %v2483_v11 }
 0x311   : > { %v2482_v22 = vadd.f32 %v4209_v14, %v2459_v4 }
 0x313   : > { %2823 = vst [vmem:[%s4213_s28 + $0x30] sm:$0xff] %v2482_v22  ;;  %v3246_v39 = vpop.f32.mrb[56].mxu1 }
 0x314   : > { %v2410_v45 = vpop.f32.mrb[57].mxu1 }
 0x315   : > { %v2461_v53 = vadd.f32 %v2410_v45, %v2034_v35  ;;  %v3247_v32 = vpop.f32.mrb[58].mxu1 }
 0x316   : > { %v2463_v47 = vadd.f32 %v3247_v32, %v2044_v20  ;;  %v2413_v41 = vpop.f32.mrb[59].mxu1 }
 0x317   : > { %v2484_v43 = vadd.f32 %v4209_v14, %v2461_v53  ;;  %v2462_v48 = vadd.f32 %v2413_v41, %v2037_v49 }
 0x318   : > { %v2486_v54 = vadd.f32 %v4209_v14, %v2463_v47 }
 0x319   : > { %2825 = vst [vmem:[%s4213_s28 + $0x40] sm:$0xff] %v2484_v43  ;;  %v2485_v55 = vadd.f32 %v4209_v14, %v2462_v48 }
 0x31a   : > { %2827 = vst [vmem:[%s4213_s28 + $0x50] sm:$0xff] %v2486_v54 }
 0x31b   : > { %2826 = vst [vmem:[%s4213_s28 + $0x48] sm:$0xff] %v2485_v55  ;;  %v3250_v56 = vpop.f32.mrb[60].mxu1 }
 0x31c   : > { %v2465_v24 = vadd.f32 %v3250_v56, %v4195_v38  ;;  %v2425_v57 = vpop.f32.mrb[61].mxu1 }
 0x31d   : > { %v2464_v58 = vadd.f32 %v2425_v57, %v4197_v2  ;;  %v3251_v0 = vpop.f32.mrb[62].mxu1 }
 0x31e   : > { %v2488_v19 = vadd.f32 %v4209_v14, %v2465_v24  ;;  %v2466_v25 = vadd.f32 %v3251_v0, %v4199_v6  ;;  %v2428_v35 = vpop.f32.mrb[63].mxu1 }
 0x31f   : > { %v2487_v10 = vadd.f32 %v4209_v14, %v2464_v58 }
 0x320   : > { %2829 = vst [vmem:[%s4213_s28 + $0x60] sm:$0xff] %v2488_v19  ;;  %v2489_v20 = vadd.f32 %v4209_v14, %v2466_v25 }
 0x321   : > { %2828 = vst [vmem:[%s4213_s28 + $0x58] sm:$0xff] %v2487_v10 }
 0x322   : > { %2830 = vst [vmem:[%s4213_s28 + $0x68] sm:$0xff] %v2489_v20 }
 0x323   : > { %v3254_v59 = vpop.f32.mrb[64].mxu1 }
 0x324   : > { %v2468_v49 = vadd.f32 %v3254_v59, %v4201_v9  ;;  %v2440_v60 = vpop.f32.mrb[65].mxu1 }
 0x325   : > { %v3255_v38 = vpop.f32.mrb[66].mxu1 }
 0x326   : > { %v2491_v62 = vadd.f32 %v4209_v14, %v2468_v49  ;;  %v2442_v2 = vpop.f32.mrb[67].mxu1 }
 0x327   : > { %v2467_v5 = vadd.f32 %v2442_v2, %v4203_v13 }
 0x328   : > { %2832 = vst [vmem:[%s4213_s28 + $0x78] sm:$0xff] %v2491_v62 }
 0x329   : > { %v2490_v6 = vadd.f32 %v4209_v14, %v2467_v5 }
 0x32b   : > { %2831 = vst [vmem:[%s4213_s28 + $0x70] sm:$0xff] %v2490_v6 }
 0x32c   : > { %3581 = shalt.err (!%p3578_p1)
}
 0x32d   : > { %s3582_s24 = scalar_lea.hbm %s4253_s17, 2048  ;;  %s3586_s16 = scalar_lea.hbm %s4306_s5, 4096 }
 0x32e   : > { %p3583_p13 = scmp.ne.s32.totalorder %s4253_s17, %s3582_s24  ;;  %p3587_p4 = scmp.lt.u32.totalorder %s4253_s17, %s4306_s5 }
 0x32f   : > { %p3588_p5 = scmp.lt.u32.totalorder %s3586_s16, %s3582_s24  ;;  %p3590_p11 = scmp.lt.u32.totalorder %s3582_s24, %s4253_s17 }
 0x330   : > { %p3584_p6 = pnand %p3583_p13, %p4320_p0 }
 0x331   : > { %p3589_p8 = por %p3588_p5, %p3587_p4 }
 0x332   : > { %p3585_p10 = pneg %p3584_p6 }
 0x333   : > { %p3591_p2 = por %p3590_p11, %p3589_p8 }
 0x335   : > { %p3592_p3 = pnand %p3591_p2, %p3585_p10 }
 0x337   : > { %3595 = shalt.err (!%p3592_p3)
}
 0x338   : > { %s3647_s12 = smov 128   ;;  %s3648_s30 = smov 8  }
 0x339   : > { %3322 = dma.vmem_to_hbm [thread:$0]  (%p4320_p0), %s4255_s13, 2048, %s4253_s17, %s2516_s22, %s3647_s12, %s3647_s12, %s3648_s30  }
 0x33a PF: > { %s2545_s11 = sand.u32 1, %s3626_s18   ;;  %p4321_p7 = scmp.ne.s32.totalorder %s4311_s25, 0 }
 0x33b   : > { %p4322_p9 = scmp.ge.s32.totalorder %s3638_s21, 2  ;;  %s2546_s7 = scalar_lea.sflag [#allocation6], %s2545_s11 }
 0x33d   : > { %p3336_p12 = pnand %p4322_p9, %p4321_p7 }
 0x33f   : > { %3621 = dma.done.wait (!%p3336_p12), %s2546_s7, 2048  }
 0x340   : > { %3623 = vsyncadd (!%p3336_p12), %s2546_s7, 4294965248  ;;  %p19_p1 = scmp.ge.s32.totalorder %s3795_s29, 4   ;;  %s4323_s18 = smov %s3630_s19 }
 0x341   : > { %s4324_s19 = smov %s3634_s20  ;;  %s4325_s20 = smov %s3811_s27 }
 0x342   : > { %s4326_s21 = smov %s3795_s29  ;;  %21 = sbr.rel (!%p19_p1) target bundleno = 6 (0x6), region = 111 }
 0x349   :  { %2551 = vsyncpa [#allocation5], 1 }
 0x34a   :  { %2553 = vsyncpa [#allocation5 + $0x1], 1 }
 0x34b   :  { %2554 = vsyncpa [#allocation8], 1 }
 0x34c   :  { %2555 = vsyncpa [#allocation6], 1 }
 0x34d   :  { %2557 = vsyncpa [#allocation6 + $0x1], 1 }

</bundles_post_ra>
